<compile_context>
chip_gen: v7x
topology: tpu7x:2x2x1
jax: 0.10.0
libtpu: 0.0.40
codegen_flags: <defaults>
</compile_context>

<pallas_src>
import functools

import jax
import jax.numpy as jnp
from jax.experimental import pallas as pl
from jax.experimental.pallas import tpu as pltpu

HIGHEST = jax.lax.Precision.HIGHEST
LANES = 128


# ----------------------------------------------------------------------------
# Wrapper-side weight reparametrization (exact; constant-folded under jit).
# ----------------------------------------------------------------------------
def conv_pool_weight(wc, W):
    """Stride-1 'same' conv as ONE banded matmul with the width (lane) half of
    the 2x2 max-pool folded into the columns.

    wc: (Cout, Cin, k, k).  Returns M of shape (k*Cin*W, 2*Cout*(W//2)) with
    rows ordered (ki, ci, c) and columns [even phase | odd phase], each phase
    laid out (co, j):
        (A @ M)[h,               co*(W//2)+j] = conv(x)[co, h, 2j]
        (A @ M)[h, Cout*(W//2) + co*(W//2)+j] = conv(x)[co, h, 2j+1]
    where A[h, (ki*Cin+ci)*W + c] = x[ci, h+ki-pad, c] (zero rows for the row
    padding).  Column ('same') padding is absorbed by the band structure.
    """
    Cout, Cin, k, _ = wc.shape
    pad = (k - 1) // 2
    c = jnp.arange(W)[:, None]                      # source column
    w = jnp.arange(W)[None, :]                      # output column
    kj = c - w + pad                                # tap index
    valid = ((kj >= 0) & (kj < k)).astype(wc.dtype)
    kjc = jnp.clip(kj, 0, k - 1)
    band = wc[:, :, :, kjc] * valid                 # (Cout, Cin, k, Wsrc, Wout)
    band = jnp.transpose(band, (2, 1, 3, 0, 4))     # (ki, ci, c, co, w)
    m = band.reshape(k * Cin * W, Cout, W)
    half = Cout * (W // 2)
    m_even = m[:, :, 0::2].reshape(k * Cin * W, half)
    m_odd = m[:, :, 1::2].reshape(k * Cin * W, half)
    return jnp.concatenate([m_even, m_odd], axis=1)


def pack_slab(parts):
    """Pack 2D constants into one lane-dense (rows, 128) f32 slab.  Every part
    starts at lane 0 and at a sublane offset that is a multiple of 8, so all
    in-kernel reads are aligned static slices.  Returns (slab, offsets)."""
    blocks, offsets, row = [], [], 0
    for p in parts:
        h, w = p.shape
        offsets.append(row)
        blk = jnp.pad(p.astype(jnp.float32), ((0, (-h) % 8), (0, LANES - w)))
        blocks.append(blk)
        row += blk.shape[0]
    return jnp.concatenate(blocks, axis=0), tuple(offsets)


# ----------------------------------------------------------------------------
# Fused kernel: conv1+relu+pool -> conv2+relu+pool -> flatten -> 3x linear.
# Single grid step; batch stacked along the sublane (M) axis.
# ----------------------------------------------------------------------------
def _fused_cnn_kernel(x_ref, w_ref, o_ref,
                      lhs1_ref, zb1_ref, lhs2_ref, zb2_ref, flat_ref,
                      *, N, k, c1, c2, d1, d2, d3, h1, h2, offs):
    pad = (k - 1) // 2
    om1, ob1, om2, ob2, ow1, obl1, ow2, obl2, ow3, obl3 = offs

    def matdot(a, b):
        return jnp.dot(a, b, preferred_element_type=jnp.float32,
                       precision=HIGHEST)

    def band_rows(dst_ref, src, d, bw):
        """dst[n*d+h, ki*bw:(ki+1)*bw] = src[n*d+h+ki-pad, :] with zero rows
        for the per-sample 'same' row padding (k*N small static stores)."""
        dst_ref[...] = jnp.zeros_like(dst_ref)
        for n in range(N):
            r0 = n * d
            for ki in range(k):
                s = ki - pad
                lo, hi = max(0, -s), min(d, d - s)
                dst_ref[r0 + lo:r0 + hi, ki * bw:(ki + 1) * bw] = \
                    src[r0 + lo + s:r0 + hi + s, :]

    def conv_pool(a, m, brow, zbuf_ref, rows_in, half):
        """Banded conv matmul (width pool folded into weights) + bias + ReLU,
        then the height half of the 2x2 pool as a sublane-strided VPU max."""
        z = matdot(a, m)                               # (rows_in, 2*half)
        z = jnp.maximum(z[:, :half], z[:, half:])      # width half of the pool
        z = jnp.maximum(z + brow, 0.0)                 # bias + ReLU
        zbuf_ref[...] = z
        ev = zbuf_ref[pl.ds(0, rows_in // 2, stride=2), :]
        od = zbuf_ref[pl.ds(1, rows_in // 2, stride=2), :]
        return jnp.maximum(ev, od)                     # height half of the pool

    # ---- stage 1: conv1 ('same') + ReLU + 2x2 max-pool -----------------------
    x = x_ref[...]                                     # (N*d1, d1)
    band_rows(lhs1_ref, x, d1, d1)
    m1 = w_ref[om1:om1 + k * d1, 0:2 * c1 * d2]
    b1 = w_ref[ob1:ob1 + 1, 0:c1 * d2]
    p1 = conv_pool(lhs1_ref[...], m1, b1, zb1_ref, N * d1, c1 * d2)
    # p1: (N*d2, c1*d2), layout [n*d2 + h, ci*d2 + w]

    # ---- stage 2: conv2 ('same') + ReLU + 2x2 max-pool -----------------------
    band_rows(lhs2_ref, p1, d2, c1 * d2)
    m2 = w_ref[om2:om2 + k * c1 * d2, 0:2 * c2 * d3]
    b2 = w_ref[ob2:ob2 + 1, 0:c2 * d3]
    p2 = conv_pool(lhs2_ref[...], m2, b2, zb2_ref, N * d2, c2 * d3)
    # p2: (N*d3, c2*d3), layout [n*d3 + h, c*d3 + w]

    # ---- flatten to (N, d3*c2*d3) in (h, c, w) order (matches reordered W1) --
    cw = c2 * d3
    for n in range(N):
        for h in range(d3):
            flat_ref[n:n + 1, h * cw:(h + 1) * cw] = \
                p2[n * d3 + h:n * d3 + h + 1, :]
    flat = flat_ref[...]                               # (N, d3*c2*d3)

    # ---- MLP: one matmul per linear layer ------------------------------------
    w1 = w_ref[ow1:ow1 + d3 * cw, 0:h1]
    hid = jnp.maximum(matdot(flat, w1) + w_ref[obl1:obl1 + 1, 0:h1], 0.0)
    w2 = w_ref[ow2:ow2 + h1, 0:h2]
    hid = jnp.maximum(matdot(hid, w2) + w_ref[obl2:obl2 + 1, 0:h2], 0.0)
    w3 = w_ref[ow3:ow3 + h2, :]                        # (h2, 128), zero-padded
    o_ref[...] = matdot(hid, w3) + w_ref[obl3:obl3 + 1, :]   # lane-dense store


def cnn_forward(x, wc1, bc1, wc2, bc2, wl1, bl1, wl2, bl2, wl3, bl3):
    """Fused forward pass of CNN_2D_MaxPool_Model (NCHW, f32, stride 1)."""
    N, _, d1, _ = x.shape
    c1, c2 = wc1.shape[0], wc2.shape[0]
    k = wc1.shape[2]
    d2, d3 = d1 // 2, d1 // 4
    h1, h2 = wl1.shape[1], wl2.shape[1]
    n_cls = wl3.shape[1]

    # Exact weight reparametrizations (constant-folded under jit).
    m1 = conv_pool_weight(wc1, d1)                     # (k*d1,    2*c1*d2)
    m2 = conv_pool_weight(wc2, d2)                     # (k*c1*d2, 2*c2*d3)
    b1row = jnp.repeat(bc1, d2)[None, :]               # (1, c1*d2)
    b2row = jnp.repeat(bc2, d3)[None, :]               # (1, c2*d3)
    # Fold the NCHW flatten into linear_1: rows reordered (c,h,w) -> (h,c,w).
    w1r = wl1.reshape(c2, d3, d3, h1).transpose(1, 0, 2, 3).reshape(
        c2 * d3 * d3, h1)
    # Pad linear_3 to 128 output lanes so the final store is lane-dense.
    w3p = jnp.pad(wl3, ((0, 0), (0, LANES - n_cls)))
    bl3p = jnp.pad(bl3.reshape(1, n_cls), ((0, 0), (0, LANES - n_cls)))

    slab, offs = pack_slab([m1, b1row, m2, b2row, w1r, bl1.reshape(1, h1),
                            wl2, bl2.reshape(1, h2), w3p, bl3p])
    x2d = x.reshape(N * d1, d1)                        # batch stacked along M

    kernel = functools.partial(
        _fused_cnn_kernel, N=N, k=k, c1=c1, c2=c2, d1=d1, d2=d2, d3=d3,
        h1=h1, h2=h2, offs=offs)

    out = pl.pallas_call(
        kernel,
        out_shape=jax.ShapeDtypeStruct((N, LANES), jnp.float32),
        grid=(1,),
        in_specs=[pl.BlockSpec((N * d1, d1), lambda i: (0, 0)),
                  pl.BlockSpec(slab.shape, lambda i: (0, 0))],
        out_specs=pl.BlockSpec((N, LANES), lambda i: (0, 0)),
        scratch_shapes=[
            pltpu.VMEM((N * d1, k * d1), jnp.float32),        # stage-1 im2col
            pltpu.VMEM((N * d1, c1 * d2), jnp.float32),       # stage-1 pre-pool
            pltpu.VMEM((N * d2, k * c1 * d2), jnp.float32),   # stage-2 im2col
            pltpu.VMEM((N * d2, c2 * d3), jnp.float32),       # stage-2 pre-pool
            pltpu.VMEM((N, c2 * d3 * d3), jnp.float32),       # flattened feats
        ],
        compiler_params=pltpu.CompilerParams(
            dimension_semantics=("arbitrary",)),
    )(x2d, slab)
    return out[:, :n_cls]


if __name__ == "__main__":
    # Module hyper-parameters (small, consistent with the PyTorch __init__).
    n_classes, n_filters, kernel_size, stride, img_size = 10, 8, 3, 1, 16
    N_batch = 2
    c1 = n_filters // 2                                       # 4
    c2 = n_filters                                            # 8
    hidden = n_filters * (img_size // 4) * (img_size // 4)    # 128
    h1d, h2d = hidden // 2, hidden // 4                       # 64, 32

    key = jax.random.PRNGKey(0)
    ks = jax.random.split(key, 11)
    x = jax.random.normal(ks[0], (N_batch, 1, img_size, img_size), jnp.float32)

    # PyTorch Linear stores (out,in); we keep the transpose (in,out): same map.
    wc1 = 0.2 * jax.random.normal(ks[1], (c1, 1, kernel_size, kernel_size), jnp.float32)
    bc1 = 0.1 * jax.random.normal(ks[2], (c1,), jnp.float32)
    wc2 = 0.2 * jax.random.normal(ks[3], (c2, c1, kernel_size, kernel_size), jnp.float32)
    bc2 = 0.1 * jax.random.normal(ks[4], (c2,), jnp.float32)
    wl1 = 0.1 * jax.random.normal(ks[5], (hidden, h1d), jnp.float32)
    bl1 = 0.1 * jax.random.normal(ks[6], (1, h1d), jnp.float32)
    wl2 = 0.1 * jax.random.normal(ks[7], (h1d, h2d), jnp.float32)
    bl2 = 0.1 * jax.random.normal(ks[8], (1, h2d), jnp.float32)
    wl3 = 0.1 * jax.random.normal(ks[9], (h2d, n_classes), jnp.float32)
    bl3 = 0.1 * jax.random.normal(ks[10], (1, n_classes), jnp.float32)

    fwd = jax.jit(lambda xx: cnn_forward(xx, wc1, bc1, wc2, bc2,
                                         wl1, bl1, wl2, bl2, wl3, bl3))
    y = jax.block_until_ready(fwd(x))

    # Plain-JAX reference for verification.
    def ref_forward(xx):
        def conv(z, w, b):
            out = jax.lax.conv_general_dilated(
                z, w, (stride, stride), "SAME",
                dimension_numbers=("NCHW", "OIHW", "NCHW"), precision=HIGHEST)
            return out + b[None, :, None, None]

        def pool(z):
            return jax.lax.reduce_window(z, -jnp.inf, jax.lax.max,
                                         (1, 1, 2, 2), (1, 1, 2, 2), "VALID")

        h = pool(jax.nn.relu(conv(xx, wc1, bc1)))
        h = pool(jax.nn.relu(conv(h, wc2, bc2)))
        h = h.reshape(xx.shape[0], -1)
        h = jax.nn.relu(jnp.dot(h, wl1, precision=HIGHEST) + bl1)
        h = jax.nn.relu(jnp.dot(h, wl2, precision=HIGHEST) + bl2)
        return jnp.dot(h, wl3, precision=HIGHEST) + bl3

    y_ref = ref_forward(x)
    assert y.shape == (N_batch, n_classes)
    err = float(jnp.max(jnp.abs(y - y_ref)))
    assert jnp.allclose(y, y_ref, atol=1e-3, rtol=1e-3), err
    print("KERNEL_OK")
</pallas_src>

<mosaic_0001>
module attributes {stable_mosaic.version = 11 : i64} {
  func.func @_fused_cnn_kernel(%arg0: i32, %arg1: memref<32x16xf32, #tpu.memory_space<vmem>>, %arg2: memref<408x128xf32, #tpu.memory_space<vmem>>, %arg3: memref<2x128xf32, #tpu.memory_space<vmem>>, %arg4: memref<32x48xf32, #tpu.memory_space<vmem>>, %arg5: memref<32x32xf32, #tpu.memory_space<vmem>>, %arg6: memref<16x96xf32, #tpu.memory_space<vmem>>, %arg7: memref<16x32xf32, #tpu.memory_space<vmem>>, %arg8: memref<2x128xf32, #tpu.memory_space<vmem>>) attributes {dimension_semantics = [#tpu.dimension_semantics<arbitrary>], iteration_bounds = array<i64: 1>, scalar_prefetch = 0 : i64, scratch_operands = 5 : i64, tpu.core_type = #tpu.core_type<tc>, window_params = [{pipeline_mode = #tpu.pipeline_mode<synchronous>, transform_indices = @transform_0, window_bounds = array<i64: 32, 16>}, {pipeline_mode = #tpu.pipeline_mode<synchronous>, transform_indices = @transform_1, window_bounds = array<i64: 408, 128>}, {pipeline_mode = #tpu.pipeline_mode<synchronous>, transform_indices = @transform_2, window_bounds = array<i64: 2, 128>}]} {
    %c0 = arith.constant 0 : index
    %c0_0 = arith.constant 0 : index
    %0 = vector.load %arg1[%c0, %c0_0] : memref<32x16xf32, #tpu.memory_space<vmem>>, vector<32x16xf32>
    %cst = arith.constant 0.000000e+00 : f32
    %1 = vector.broadcast %cst : f32 to vector<32x48xf32>
    %c0_1 = arith.constant 0 : index
    %c0_2 = arith.constant 0 : index
    %2 = vector.load %arg4[%c0_1, %c0_2] : memref<32x48xf32, #tpu.memory_space<vmem>>, vector<32x48xf32>
    tpu.vector_store %arg4[%c0_1, %c0_2], %1 {strides = array<i32>} : memref<32x48xf32, #tpu.memory_space<vmem>>, vector<32x48xf32>,
    %3 = vector.extract_strided_slice %0 {offsets = [0, 0], sizes = [15, 16], strides = [1, 1]} : vector<32x16xf32> to vector<15x16xf32>
    %c1 = arith.constant 1 : index
    %c0_3 = arith.constant 0 : index
    %4 = vector.load %arg4[%c1, %c0_3] : memref<32x48xf32, #tpu.memory_space<vmem>>, vector<15x16xf32>
    tpu.vector_store %arg4[%c1, %c0_3], %3 {strides = array<i32>} : memref<32x48xf32, #tpu.memory_space<vmem>>, vector<15x16xf32>,
    %5 = vector.extract_strided_slice %0 {offsets = [0, 0], sizes = [16, 16], strides = [1, 1]} : vector<32x16xf32> to vector<16x16xf32>
    %c0_4 = arith.constant 0 : index
    %c16 = arith.constant 16 : index
    %6 = vector.load %arg4[%c0_4, %c16] : memref<32x48xf32, #tpu.memory_space<vmem>>, vector<16x16xf32>
    tpu.vector_store %arg4[%c0_4, %c16], %5 {strides = array<i32>} : memref<32x48xf32, #tpu.memory_space<vmem>>, vector<16x16xf32>,
    %7 = vector.extract_strided_slice %0 {offsets = [1, 0], sizes = [15, 16], strides = [1, 1]} : vector<32x16xf32> to vector<15x16xf32>
    %c0_5 = arith.constant 0 : index
    %c32 = arith.constant 32 : index
    %8 = vector.load %arg4[%c0_5, %c32] : memref<32x48xf32, #tpu.memory_space<vmem>>, vector<15x16xf32>
    tpu.vector_store %arg4[%c0_5, %c32], %7 {strides = array<i32>} : memref<32x48xf32, #tpu.memory_space<vmem>>, vector<15x16xf32>,
    %9 = vector.extract_strided_slice %0 {offsets = [16, 0], sizes = [15, 16], strides = [1, 1]} : vector<32x16xf32> to vector<15x16xf32>
    %c17 = arith.constant 17 : index
    %c0_6 = arith.constant 0 : index
    %10 = vector.load %arg4[%c17, %c0_6] : memref<32x48xf32, #tpu.memory_space<vmem>>, vector<15x16xf32>
    tpu.vector_store %arg4[%c17, %c0_6], %9 {strides = array<i32>} : memref<32x48xf32, #tpu.memory_space<vmem>>, vector<15x16xf32>,
    %11 = vector.extract_strided_slice %0 {offsets = [16, 0], sizes = [16, 16], strides = [1, 1]} : vector<32x16xf32> to vector<16x16xf32>
    %c16_7 = arith.constant 16 : index
    %c16_8 = arith.constant 16 : index
    %12 = vector.load %arg4[%c16_7, %c16_8] : memref<32x48xf32, #tpu.memory_space<vmem>>, vector<16x16xf32>
    tpu.vector_store %arg4[%c16_7, %c16_8], %11 {strides = array<i32>} : memref<32x48xf32, #tpu.memory_space<vmem>>, vector<16x16xf32>,
    %13 = vector.extract_strided_slice %0 {offsets = [17, 0], sizes = [15, 16], strides = [1, 1]} : vector<32x16xf32> to vector<15x16xf32>
    %c16_9 = arith.constant 16 : index
    %c32_10 = arith.constant 32 : index
    %14 = vector.load %arg4[%c16_9, %c32_10] : memref<32x48xf32, #tpu.memory_space<vmem>>, vector<15x16xf32>
    tpu.vector_store %arg4[%c16_9, %c32_10], %13 {strides = array<i32>} : memref<32x48xf32, #tpu.memory_space<vmem>>, vector<15x16xf32>,
    %c0_11 = arith.constant 0 : index
    %c0_12 = arith.constant 0 : index
    %15 = vector.load %arg2[%c0_11, %c0_12] : memref<408x128xf32, #tpu.memory_space<vmem>>, vector<48x64xf32>
    %c48 = arith.constant 48 : index
    %c0_13 = arith.constant 0 : index
    %16 = vector.load %arg2[%c48, %c0_13] : memref<408x128xf32, #tpu.memory_space<vmem>>, vector<1x32xf32>
    %c0_14 = arith.constant 0 : index
    %c0_15 = arith.constant 0 : index
    %17 = vector.load %arg4[%c0_14, %c0_15] : memref<32x48xf32, #tpu.memory_space<vmem>>, vector<32x48xf32>
    %cst_16 = arith.constant dense<0.000000e+00> : vector<32x64xf32>
    %18 = tpu.matmul %17, %15, %cst_16 {dimension_numbers = #tpu.dot_dimension_numbers<[1], [0], [0], [1], [0, 0, 1, 1], [], []>, precision = #tpu.contract_precision<fp32>} : vector<32x48xf32>, vector<48x64xf32>, vector<32x64xf32> -> vector<32x64xf32>
    %19 = vector.extract_strided_slice %18 {offsets = [0, 0], sizes = [32, 32], strides = [1, 1]} : vector<32x64xf32> to vector<32x32xf32>
    %20 = vector.extract_strided_slice %18 {offsets = [0, 32], sizes = [32, 32], strides = [1, 1]} : vector<32x64xf32> to vector<32x32xf32>
    %21 = arith.maximumf %19, %20 : vector<32x32xf32>
    %22 = vector.broadcast %16 : vector<1x32xf32> to vector<32x32xf32>
    %23 = arith.addf %21, %22 : vector<32x32xf32>
    %cst_17 = arith.constant 0.000000e+00 : f32
    %24 = vector.broadcast %cst_17 : f32 to vector<32x32xf32>
    %25 = arith.maximumf %23, %24 : vector<32x32xf32>
    %c0_18 = arith.constant 0 : index
    %c0_19 = arith.constant 0 : index
    %26 = vector.load %arg5[%c0_18, %c0_19] : memref<32x32xf32, #tpu.memory_space<vmem>>, vector<32x32xf32>
    tpu.vector_store %arg5[%c0_18, %c0_19], %25 {strides = array<i32>} : memref<32x32xf32, #tpu.memory_space<vmem>>, vector<32x32xf32>,
    %c0_20 = arith.constant 0 : index
    %c0_21 = arith.constant 0 : index
    %27 = tpu.strided_load %arg5[%c0_20, %c0_21] {strides = array<i32: 2, 1>} : memref<32x32xf32, #tpu.memory_space<vmem>>, vector<16x32xf32>
    %c1_22 = arith.constant 1 : index
    %c0_23 = arith.constant 0 : index
    %28 = tpu.strided_load %arg5[%c1_22, %c0_23] {strides = array<i32: 2, 1>} : memref<32x32xf32, #tpu.memory_space<vmem>>, vector<16x32xf32>
    %29 = arith.maximumf %27, %28 : vector<16x32xf32>
    %cst_24 = arith.constant 0.000000e+00 : f32
    %30 = vector.broadcast %cst_24 : f32 to vector<16x96xf32>
    %c0_25 = arith.constant 0 : index
    %c0_26 = arith.constant 0 : index
    %31 = vector.load %arg6[%c0_25, %c0_26] : memref<16x96xf32, #tpu.memory_space<vmem>>, vector<16x96xf32>
    tpu.vector_store %arg6[%c0_25, %c0_26], %30 {strides = array<i32>} : memref<16x96xf32, #tpu.memory_space<vmem>>, vector<16x96xf32>,
    %32 = vector.extract_strided_slice %29 {offsets = [0, 0], sizes = [7, 32], strides = [1, 1]} : vector<16x32xf32> to vector<7x32xf32>
    %c1_27 = arith.constant 1 : index
    %c0_28 = arith.constant 0 : index
    %33 = vector.load %arg6[%c1_27, %c0_28] : memref<16x96xf32, #tpu.memory_space<vmem>>, vector<7x32xf32>
    tpu.vector_store %arg6[%c1_27, %c0_28], %32 {strides = array<i32>} : memref<16x96xf32, #tpu.memory_space<vmem>>, vector<7x32xf32>,
    %34 = vector.extract_strided_slice %29 {offsets = [0, 0], sizes = [8, 32], strides = [1, 1]} : vector<16x32xf32> to vector<8x32xf32>
    %c0_29 = arith.constant 0 : index
    %c32_30 = arith.constant 32 : index
    %35 = vector.load %arg6[%c0_29, %c32_30] : memref<16x96xf32, #tpu.memory_space<vmem>>, vector<8x32xf32>
    tpu.vector_store %arg6[%c0_29, %c32_30], %34 {strides = array<i32>} : memref<16x96xf32, #tpu.memory_space<vmem>>, vector<8x32xf32>,
    %36 = vector.extract_strided_slice %29 {offsets = [1, 0], sizes = [7, 32], strides = [1, 1]} : vector<16x32xf32> to vector<7x32xf32>
    %c0_31 = arith.constant 0 : index
    %c64 = arith.constant 64 : index
    %37 = vector.load %arg6[%c0_31, %c64] : memref<16x96xf32, #tpu.memory_space<vmem>>, vector<7x32xf32>
    tpu.vector_store %arg6[%c0_31, %c64], %36 {strides = array<i32>} : memref<16x96xf32, #tpu.memory_space<vmem>>, vector<7x32xf32>,
    %38 = vector.extract_strided_slice %29 {offsets = [8, 0], sizes = [7, 32], strides = [1, 1]} : vector<16x32xf32> to vector<7x32xf32>
    %c9 = arith.constant 9 : index
    %c0_32 = arith.constant 0 : index
    %39 = vector.load %arg6[%c9, %c0_32] : memref<16x96xf32, #tpu.memory_space<vmem>>, vector<7x32xf32>
    tpu.vector_store %arg6[%c9, %c0_32], %38 {strides = array<i32>} : memref<16x96xf32, #tpu.memory_space<vmem>>, vector<7x32xf32>,
    %40 = vector.extract_strided_slice %29 {offsets = [8, 0], sizes = [8, 32], strides = [1, 1]} : vector<16x32xf32> to vector<8x32xf32>
    %c8 = arith.constant 8 : index
    %c32_33 = arith.constant 32 : index
    %41 = vector.load %arg6[%c8, %c32_33] : memref<16x96xf32, #tpu.memory_space<vmem>>, vector<8x32xf32>
    tpu.vector_store %arg6[%c8, %c32_33], %40 {strides = array<i32>} : memref<16x96xf32, #tpu.memory_space<vmem>>, vector<8x32xf32>,
    %42 = vector.extract_strided_slice %29 {offsets = [9, 0], sizes = [7, 32], strides = [1, 1]} : vector<16x32xf32> to vector<7x32xf32>
    %c8_34 = arith.constant 8 : index
    %c64_35 = arith.constant 64 : index
    %43 = vector.load %arg6[%c8_34, %c64_35] : memref<16x96xf32, #tpu.memory_space<vmem>>, vector<7x32xf32>
    tpu.vector_store %arg6[%c8_34, %c64_35], %42 {strides = array<i32>} : memref<16x96xf32, #tpu.memory_space<vmem>>, vector<7x32xf32>,
    %c56 = arith.constant 56 : index
    %c0_36 = arith.constant 0 : index
    %44 = vector.load %arg2[%c56, %c0_36] : memref<408x128xf32, #tpu.memory_space<vmem>>, vector<96x64xf32>
    %c152 = arith.constant 152 : index
    %c0_37 = arith.constant 0 : index
    %45 = vector.load %arg2[%c152, %c0_37] : memref<408x128xf32, #tpu.memory_space<vmem>>, vector<1x32xf32>
    %c0_38 = arith.constant 0 : index
    %c0_39 = arith.constant 0 : index
    %46 = vector.load %arg6[%c0_38, %c0_39] : memref<16x96xf32, #tpu.memory_space<vmem>>, vector<16x96xf32>
    %cst_40 = arith.constant dense<0.000000e+00> : vector<16x64xf32>
    %47 = tpu.matmul %46, %44, %cst_40 {dimension_numbers = #tpu.dot_dimension_numbers<[1], [0], [0], [1], [0, 0, 1, 1], [], []>, precision = #tpu.contract_precision<fp32>} : vector<16x96xf32>, vector<96x64xf32>, vector<16x64xf32> -> vector<16x64xf32>
    %48 = vector.extract_strided_slice %47 {offsets = [0, 0], sizes = [16, 32], strides = [1, 1]} : vector<16x64xf32> to vector<16x32xf32>
    %49 = vector.extract_strided_slice %47 {offsets = [0, 32], sizes = [16, 32], strides = [1, 1]} : vector<16x64xf32> to vector<16x32xf32>
    %50 = arith.maximumf %48, %49 : vector<16x32xf32>
    %51 = vector.broadcast %45 : vector<1x32xf32> to vector<16x32xf32>
    %52 = arith.addf %50, %51 : vector<16x32xf32>
    %cst_41 = arith.constant 0.000000e+00 : f32
    %53 = vector.broadcast %cst_41 : f32 to vector<16x32xf32>
    %54 = arith.maximumf %52, %53 : vector<16x32xf32>
    %c0_42 = arith.constant 0 : index
    %c0_43 = arith.constant 0 : index
    %55 = vector.load %arg7[%c0_42, %c0_43] : memref<16x32xf32, #tpu.memory_space<vmem>>, vector<16x32xf32>
    tpu.vector_store %arg7[%c0_42, %c0_43], %54 {strides = array<i32>} : memref<16x32xf32, #tpu.memory_space<vmem>>, vector<16x32xf32>,
    %c0_44 = arith.constant 0 : index
    %c0_45 = arith.constant 0 : index
    %56 = tpu.strided_load %arg7[%c0_44, %c0_45] {strides = array<i32: 2, 1>} : memref<16x32xf32, #tpu.memory_space<vmem>>, vector<8x32xf32>
    %c1_46 = arith.constant 1 : index
    %c0_47 = arith.constant 0 : index
    %57 = tpu.strided_load %arg7[%c1_46, %c0_47] {strides = array<i32: 2, 1>} : memref<16x32xf32, #tpu.memory_space<vmem>>, vector<8x32xf32>
    %58 = arith.maximumf %56, %57 : vector<8x32xf32>
    %59 = vector.extract_strided_slice %58 {offsets = [0, 0], sizes = [1, 32], strides = [1, 1]} : vector<8x32xf32> to vector<1x32xf32>
    %c0_48 = arith.constant 0 : index
    %c0_49 = arith.constant 0 : index
    %60 = vector.load %arg8[%c0_48, %c0_49] : memref<2x128xf32, #tpu.memory_space<vmem>>, vector<1x32xf32>
    tpu.vector_store %arg8[%c0_48, %c0_49], %59 {strides = array<i32>} : memref<2x128xf32, #tpu.memory_space<vmem>>, vector<1x32xf32>,
    %61 = vector.extract_strided_slice %58 {offsets = [1, 0], sizes = [1, 32], strides = [1, 1]} : vector<8x32xf32> to vector<1x32xf32>
    %c0_50 = arith.constant 0 : index
    %c32_51 = arith.constant 32 : index
    %62 = vector.load %arg8[%c0_50, %c32_51] : memref<2x128xf32, #tpu.memory_space<vmem>>, vector<1x32xf32>
    tpu.vector_store %arg8[%c0_50, %c32_51], %61 {strides = array<i32>} : memref<2x128xf32, #tpu.memory_space<vmem>>, vector<1x32xf32>,
    %63 = vector.extract_strided_slice %58 {offsets = [2, 0], sizes = [1, 32], strides = [1, 1]} : vector<8x32xf32> to vector<1x32xf32>
    %c0_52 = arith.constant 0 : index
    %c64_53 = arith.constant 64 : index
    %64 = vector.load %arg8[%c0_52, %c64_53] : memref<2x128xf32, #tpu.memory_space<vmem>>, vector<1x32xf32>
    tpu.vector_store %arg8[%c0_52, %c64_53], %63 {strides = array<i32>} : memref<2x128xf32, #tpu.memory_space<vmem>>, vector<1x32xf32>,
    %65 = vector.extract_strided_slice %58 {offsets = [3, 0], sizes = [1, 32], strides = [1, 1]} : vector<8x32xf32> to vector<1x32xf32>
    %c0_54 = arith.constant 0 : index
    %c96 = arith.constant 96 : index
    %66 = vector.load %arg8[%c0_54, %c96] : memref<2x128xf32, #tpu.memory_space<vmem>>, vector<1x32xf32>
    tpu.vector_store %arg8[%c0_54, %c96], %65 {strides = array<i32>} : memref<2x128xf32, #tpu.memory_space<vmem>>, vector<1x32xf32>,
    %67 = vector.extract_strided_slice %58 {offsets = [4, 0], sizes = [1, 32], strides = [1, 1]} : vector<8x32xf32> to vector<1x32xf32>
    %c1_55 = arith.constant 1 : index
    %c0_56 = arith.constant 0 : index
    %68 = vector.load %arg8[%c1_55, %c0_56] : memref<2x128xf32, #tpu.memory_space<vmem>>, vector<1x32xf32>
    tpu.vector_store %arg8[%c1_55, %c0_56], %67 {strides = array<i32>} : memref<2x128xf32, #tpu.memory_space<vmem>>, vector<1x32xf32>,
    %69 = vector.extract_strided_slice %58 {offsets = [5, 0], sizes = [1, 32], strides = [1, 1]} : vector<8x32xf32> to vector<1x32xf32>
    %c1_57 = arith.constant 1 : index
    %c32_58 = arith.constant 32 : index
    %70 = vector.load %arg8[%c1_57, %c32_58] : memref<2x128xf32, #tpu.memory_space<vmem>>, vector<1x32xf32>
    tpu.vector_store %arg8[%c1_57, %c32_58], %69 {strides = array<i32>} : memref<2x128xf32, #tpu.memory_space<vmem>>, vector<1x32xf32>,
    %71 = vector.extract_strided_slice %58 {offsets = [6, 0], sizes = [1, 32], strides = [1, 1]} : vector<8x32xf32> to vector<1x32xf32>
    %c1_59 = arith.constant 1 : index
    %c64_60 = arith.constant 64 : index
    %72 = vector.load %arg8[%c1_59, %c64_60] : memref<2x128xf32, #tpu.memory_space<vmem>>, vector<1x32xf32>
    tpu.vector_store %arg8[%c1_59, %c64_60], %71 {strides = array<i32>} : memref<2x128xf32, #tpu.memory_space<vmem>>, vector<1x32xf32>,
    %73 = vector.extract_strided_slice %58 {offsets = [7, 0], sizes = [1, 32], strides = [1, 1]} : vector<8x32xf32> to vector<1x32xf32>
    %c1_61 = arith.constant 1 : index
    %c96_62 = arith.constant 96 : index
    %74 = vector.load %arg8[%c1_61, %c96_62] : memref<2x128xf32, #tpu.memory_space<vmem>>, vector<1x32xf32>
    tpu.vector_store %arg8[%c1_61, %c96_62], %73 {strides = array<i32>} : memref<2x128xf32, #tpu.memory_space<vmem>>, vector<1x32xf32>,
    %c0_63 = arith.constant 0 : index
    %c0_64 = arith.constant 0 : index
    %75 = vector.load %arg8[%c0_63, %c0_64] : memref<2x128xf32, #tpu.memory_space<vmem>>, vector<2x128xf32>
    %c160 = arith.constant 160 : index
    %c0_65 = arith.constant 0 : index
    %76 = vector.load %arg2[%c160, %c0_65] : memref<408x128xf32, #tpu.memory_space<vmem>>, vector<128x64xf32>
    %cst_66 = arith.constant dense<0.000000e+00> : vector<2x64xf32>
    %77 = tpu.matmul %75, %76, %cst_66 {dimension_numbers = #tpu.dot_dimension_numbers<[1], [0], [0], [1], [0, 0, 1, 1], [], []>, precision = #tpu.contract_precision<fp32>} : vector<2x128xf32>, vector<128x64xf32>, vector<2x64xf32> -> vector<2x64xf32>
    %c288 = arith.constant 288 : index
    %c0_67 = arith.constant 0 : index
    %78 = vector.load %arg2[%c288, %c0_67] : memref<408x128xf32, #tpu.memory_space<vmem>>, vector<1x64xf32>
    %79 = vector.broadcast %78 : vector<1x64xf32> to vector<2x64xf32>
    %80 = arith.addf %77, %79 : vector<2x64xf32>
    %cst_68 = arith.constant 0.000000e+00 : f32
    %81 = vector.broadcast %cst_68 : f32 to vector<2x64xf32>
    %82 = arith.maximumf %80, %81 : vector<2x64xf32>
    %c296 = arith.constant 296 : index
    %c0_69 = arith.constant 0 : index
    %83 = vector.load %arg2[%c296, %c0_69] : memref<408x128xf32, #tpu.memory_space<vmem>>, vector<64x32xf32>
    %cst_70 = arith.constant dense<0.000000e+00> : vector<2x32xf32>
    %84 = tpu.matmul %82, %83, %cst_70 {dimension_numbers = #tpu.dot_dimension_numbers<[1], [0], [0], [1], [0, 0, 1, 1], [], []>, precision = #tpu.contract_precision<fp32>} : vector<2x64xf32>, vector<64x32xf32>, vector<2x32xf32> -> vector<2x32xf32>
    %c360 = arith.constant 360 : index
    %c0_71 = arith.constant 0 : index
    %85 = vector.load %arg2[%c360, %c0_71] : memref<408x128xf32, #tpu.memory_space<vmem>>, vector<1x32xf32>
    %86 = vector.broadcast %85 : vector<1x32xf32> to vector<2x32xf32>
    %87 = arith.addf %84, %86 : vector<2x32xf32>
    %cst_72 = arith.constant 0.000000e+00 : f32
    %88 = vector.broadcast %cst_72 : f32 to vector<2x32xf32>
    %89 = arith.maximumf %87, %88 : vector<2x32xf32>
    %c368 = arith.constant 368 : index
    %c0_73 = arith.constant 0 : index
    %90 = vector.load %arg2[%c368, %c0_73] : memref<408x128xf32, #tpu.memory_space<vmem>>, vector<32x128xf32>
    %cst_74 = arith.constant dense<0.000000e+00> : vector<2x128xf32>
    %91 = tpu.matmul %89, %90, %cst_74 {dimension_numbers = #tpu.dot_dimension_numbers<[1], [0], [0], [1], [0, 0, 1, 1], [], []>, precision = #tpu.contract_precision<fp32>} : vector<2x32xf32>, vector<32x128xf32>, vector<2x128xf32> -> vector<2x128xf32>
    %c400 = arith.constant 400 : index
    %c0_75 = arith.constant 0 : index
    %92 = vector.load %arg2[%c400, %c0_75] : memref<408x128xf32, #tpu.memory_space<vmem>>, vector<1x128xf32>
    %93 = vector.broadcast %92 : vector<1x128xf32> to vector<2x128xf32>
    %94 = arith.addf %91, %93 : vector<2x128xf32>
    %c0_76 = arith.constant 0 : index
    %c0_77 = arith.constant 0 : index
    %95 = vector.load %arg3[%c0_76, %c0_77] : memref<2x128xf32, #tpu.memory_space<vmem>>, vector<2x128xf32>
    tpu.vector_store %arg3[%c0_76, %c0_77], %94 {strides = array<i32>} : memref<2x128xf32, #tpu.memory_space<vmem>>, vector<2x128xf32>,
    return
  }
  func.func @transform_0(%arg0: i32) -> (i32, i32) {
    %c0_i32 = arith.constant 0 : i32
    %c0_i32_0 = arith.constant 0 : i32
    %c0_i32_1 = arith.constant 0 : i32
    return %c0_i32, %c0_i32_0 : i32, i32
  }
  func.func @transform_1(%arg0: i32) -> (i32, i32) {
    %c0_i32 = arith.constant 0 : i32
    %c0_i32_0 = arith.constant 0 : i32
    %c0_i32_1 = arith.constant 0 : i32
    return %c0_i32, %c0_i32_0 : i32, i32
  }
  func.func @transform_2(%arg0: i32) -> (i32, i32) {
    %c0_i32 = arith.constant 0 : i32
    %c0_i32_0 = arith.constant 0 : i32
    %c0_i32_1 = arith.constant 0 : i32
    return %c0_i32, %c0_i32_0 : i32, i32
  }
}

</mosaic_0001>

<bundles_post_ra>
// kernel: _lambda_.1
= control target key start
LH: loop header
LB: loop body
LE: loop exit
PB: predicated region body
PF: predicated region fallthrough
CT: control target
= control target key end

     0   :  { %vm16_vm0 = vcmask 392192   ;;  %vm21_vm1 = vcmask 130048   ;;  %v4792_v1 = vmov 0.0   ;;  %s4793_s11 = smov 32   ;;  %s4794_s12 = smov 16   ;;  %vm23_vm2 = vcmask 129024   ;;  %s5784_s0 = inlined_call_operand.vmem [shape: f32[32,16], index: 0, kind: input, shape index: {}]   ;;  %s5785_s1 = inlined_call_operand.vmem [shape: f32[408,128], index: 1, kind: input, shape index: {}]   ;;  %s5786_s2 = inlined_call_operand.hbm [shape: f32[2,128], index: 2, kind: output, shape index: {}]  }
   0x1   :  { %v12_v0 = vld [vmem:[%s5784_s0] sm:$0xff]  ;;  %17 = vst.msk [vmem:[#allocation2] sm:$0xff] %vm16_vm0, %v4792_v1  ;;  %18 = vst.msk [vmem:[#allocation2 + $0x8] sm:$0xff] %vm16_vm0, %v4792_v1  ;;  %v13_v2 = vld [vmem:[%s5784_s0 + $0x8] sm:$0xff] }
   0x2   :  { %36 = vrot.lane.b32.xlu1 %v12_v0, %s4793_s11  ;;  %19 = vst.msk [vmem:[#allocation2 + $0x10] sm:$0xff] %vm16_vm0, %v4792_v1  ;;  %20 = vst.msk [vmem:[#allocation2 + $0x18] sm:$0xff] %vm16_vm0, %v4792_v1  ;;  %27 = vrot.lane.b32.xlu0 %v12_v0, %s4794_s12  ;;  %v15_v3 = vld [vmem:[%s5784_s0 + $0x18] sm:$0xff]  ;;  %v14_v4 = vld [vmem:[%s5784_s0 + $0x10] sm:$0xff] }
   0x3   :  { %22 = vst.msk [vmem:[#allocation2 + $0x1] sm:$0xff] %vm21_vm1, %v12_v0  ;;  %v66_v5 = vld [vmem:[%s5785_s1] sm:$0xff]  ;;  %v67_v6 = vld [vmem:[%s5785_s1 + $0x8] sm:$0xff]  ;;  %46 = vst.msk [vmem:[#allocation2 + $0x11] sm:$0xff] %vm21_vm1, %v14_v4 }
   0x4   :  { %24 = vst.msk [vmem:[#allocation2 + $0x9] sm:$0x7f] %vm23_vm2, %v13_v2  ;;  %47 = vst.msk [vmem:[#allocation2 + $0x19] sm:$0x7f] %vm23_vm2, %v15_v3  ;;  %v90_v7 = vand.u32 4294901760, %v66_v5  ;;  %v93_v8 = vand.u32 4294901760, %v67_v6 }
   0x5   :  { %v68_v9 = vld [vmem:[%s5785_s1 + $0x10] sm:$0xff]  ;;  %v69_v10 = vld [vmem:[%s5785_s1 + $0x18] sm:$0xff]  ;;  %v70_v11 = vld [vmem:[%s5785_s1 + $0x20] sm:$0xff] }
   0x6   :  { %v96_v12 = vand.u32 4294901760, %v68_v9  ;;  %v99_v13 = vand.u32 4294901760, %v69_v10  ;;  %v71_v14 = vld [vmem:[%s5785_s1 + $0x28] sm:$0xff] }
   0x7   :  { %7 = vsyncpa [#allocation8], 0  ;;  %38 = vrot.lane.b32.xlu1 %v13_v2, %s4793_s11  ;;  %29 = vrot.lane.b32.xlu0 %v13_v2, %s4794_s12  ;;  %v4859_v15 = vpack.c.bf16 %v93_v8, %v90_v7  ;;  %v202_v16 = vsub.f32 %v66_v5, %v90_v7  ;;  %v209_v17 = vsub.f32 %v67_v6, %v93_v8  ;;  %v102_v19 = vand.u32 4294901760, %v70_v11  ;;  %s4795_s30 = smov 96   ;;  %s4796_s29 = smov 64  }
   0x8   :  { %v4861_v18 = vpack.c.bf16 %v99_v13, %v96_v12  ;;  %v105_v20 = vand.u32 4294901760, %v71_v14  ;;  %v216_v23 = vsub.f32 %v68_v9, %v96_v12  ;;  %v223_v24 = vsub.f32 %v69_v10, %v99_v13 }
   0x9   :  { %4231 = vmatprep.subr.bf16.mxu0 %v4859_v15  ;;  %v203_v21 = vand.u32 4294901760, %v202_v16  ;;  %v210_v22 = vand.u32 4294901760, %v209_v17  ;;  %v230_v33 = vsub.f32 %v70_v11, %v102_v19  ;;  %v4878_v47 = vpack.c.bf16 %v209_v17, %v202_v16 }
   0xa   :  { %4233 = vmatpush3.bf16.msra.mxu0 %v4859_v15  ;;  %v217_v27 = vand.u32 4294901760, %v216_v23  ;;  %v4868_v28 = vpack.c.bf16 %v105_v20, %v102_v19  ;;  %v224_v29 = vand.u32 4294901760, %v223_v24  ;;  %v237_v35 = vsub.f32 %v71_v14, %v105_v20 }
   0xb   :  { %52 = vrot.lane.b32.xlu1 %v15_v3, %s4794_s12  ;;  %50 = vrot.lane.b32.xlu0 %v14_v4, %s4794_s12  ;;  %v204_v25 = vsub.f32 %v202_v16, %v203_v21  ;;  %v211_v26 = vsub.f32 %v209_v17, %v210_v22  ;;  %v231_v38 = vand.u32 4294901760, %v230_v33  ;;  %v4880_v48 = vpack.c.bf16 %v223_v24, %v216_v23 }
   0xc   :  { %4235 = vmatprep.subr.bf16.mxu0 %v4861_v18  ;;  %v218_v32 = vsub.f32 %v216_v23, %v217_v27  ;;  %v225_v34 = vsub.f32 %v223_v24, %v224_v29  ;;  %v238_v40 = vand.u32 4294901760, %v237_v35  ;;  %v4882_v49 = vpack.c.bf16 %v237_v35, %v230_v33 }
   0xd   :  { %v205_v30 = vand.u32 4294901760, %v204_v25  ;;  %v212_v31 = vand.u32 4294901760, %v211_v26  ;;  %v232_v41 = vsub.f32 %v230_v33, %v231_v38  ;;  %v4884_v50 = vpack.c.bf16 %v210_v22, %v203_v21 }
   0xe   :  { %4237 = vmatpush3.bf16.msra.mxu0 %v4861_v18  ;;  %v219_v37 = vand.u32 4294901760, %v218_v32  ;;  %v226_v39 = vand.u32 4294901760, %v225_v34  ;;  %v239_v43 = vsub.f32 %v237_v35, %v238_v40  ;;  %v4886_v51 = vpack.c.bf16 %v224_v29, %v217_v27  ;;  %v3235_v35 = vld [vmem:[%s5785_s1 + $0x30] ss:$0 sm:$0xff] }
   0xf   :  { %60 = vrot.lane.b32.xlu1 %v15_v3, %s4793_s11  ;;  %58 = vrot.lane.b32.xlu0 %v14_v4, %s4793_s11  ;;  %v4873_v36 = vpack.c.bf16 %v212_v31, %v205_v30  ;;  %v233_v44 = vand.u32 4294901760, %v232_v41  ;;  %v4888_v52 = vpack.c.bf16 %v238_v40, %v231_v38  ;;  %vm33_vm3 = vcmask 261248   ;;  %v4949_v31 = vld [vmem:[%s5785_s1 + $0x40] sm:$0xff]  ;;  %v4967_v41 = vld [vmem:[%s5785_s1 + $0x48] sm:$0xff] }
  0x10   :  { %4239 = vmatprep.subr.bf16.mxu0 %v4868_v28  ;;  %v4246_v42 = vpack.c.bf16 %v226_v39, %v219_v37  ;;  %v240_v45 = vand.u32 4294901760, %v239_v43  ;;  %vm42_vm4 = vcmask 392449   ;;  %vm44_vm5 = vcmask 392448  }
  0x11   :  { %vm775_vm6 = vcmask 785408   ;;  %v826_v33 = vand.u32 4294901760, %v4949_v31  ;;  %vm761_vm7 = vcmask 261120   ;;  %vm778_vm8 = vcmask 260096  }
  0x12   :  { %4241 = vmatpush3.bf16.msra.mxu0 %v4868_v28  ;;  %v4250_v46 = vpack.c.bf16 %v240_v45, %v233_v44  ;;  %776 = vst.msk [vmem:[#allocation4] sm:$0xff] %vm775_vm6, %v4792_v1  ;;  %777 = vst.msk [vmem:[#allocation4 + $0x8] sm:$0xff] %vm775_vm6, %v4792_v1  ;;  %v829_v45 = vand.u32 4294901760, %v4967_v41  ;;  %vm784_vm9 = vcmask 523520   ;;  %vm789_vm10 = vcmask 785921  }
  0x13   :  { %4243 = vmatprep.subr.bf16.mxu0 %v4873_v36  ;;  %vm4798_vm11 = vmmov 0   ;;  %vm1478_vm12 = vcmask 253952   ;;  %vm1496_vm13 = vcmask 258052   ;;  %vm1484_vm14 = vcmask 517377  }
  0x14   :  { %vm1498_vm15 = vcmask 521477   ;;  %vm1500_vm1 = vcmask 784902   ;;  %vm1494_vm2 = vcmask 1044227  }
  0x74   :  { %v37_v53 = vpop.permute.xlu1 %36  ;;  %v28_v54 = vpop.permute.xlu0 %27 }
  0x75   :  { %34 = vst.msk [vmem:[#allocation2] sm:$0xff] %vm33_vm3, %v28_v54  ;;  %v4984_v54 = vld [vmem:[%s5785_s1 + $0x58] sm:$0xff] }
  0x76   :  { %43 = vst.msk [vmem:[#allocation2 - $0x1] sm:$0xfe] %vm42_vm4, %v37_v53 }
  0x79   :  { %v39_v55 = vpop.permute.xlu1 %38  ;;  %v30_v56 = vpop.permute.xlu0 %29 }
  0x7a   :  { %35 = vst.msk [vmem:[#allocation2 + $0x8] sm:$0xff] %vm33_vm3, %v30_v56 }
  0x7b   :  { %45 = vst.msk [vmem:[#allocation2 + $0x7] sm:$0xff] %vm44_vm5, %v39_v55  ;;  %v4989_v55 = vld [vmem:[%s5785_s1 + $0x60] sm:$0xff] }
  0x7d   :  { %v53_v57 = vpop.permute.xlu1 %52  ;;  %v51_v58 = vpop.permute.xlu0 %50 }
  0x7e   :  { %57 = vst.msk [vmem:[#allocation2 + $0x18] sm:$0xff] %vm33_vm3, %v53_v57  ;;  %56 = vst.msk [vmem:[#allocation2 + $0x10] sm:$0xff] %vm33_vm3, %v51_v58  ;;  %v835_v57 = vand.u32 4294901760, %v4984_v54  ;;  %v838_v58 = vand.u32 4294901760, %v4989_v55  ;;  %vm1502_vm3 = vcmask 1048327  }
  0x81   :  { %v61_v59 = vpop.permute.xlu1 %60  ;;  %v59_v60 = vpop.permute.xlu0 %58 }
  0x82   :  { %65 = vst.msk [vmem:[#allocation2 + $0x17] sm:$0xff] %vm44_vm5, %v61_v59  ;;  %v73_v61 = vld [vmem:[#allocation2] sm:$0xff]  ;;  %v74_v62 = vld [vmem:[#allocation2 + $0x8] sm:$0xff] }
  0x83   :  { %64 = vst.msk [vmem:[#allocation2 + $0xf] sm:$0xfe] %vm42_vm4, %v59_v60  ;;  %v78_v63 = vsel %vm16_vm0, %v73_v61, 0  ;;  %v81_v0 = vsel %vm16_vm0, %v74_v62, 0  ;;  %v4996_v61 = vpack.c.bf16 %v838_v58, %v835_v57  ;;  %v5001_v62 = vld [vmem:[%s5785_s1 + $0x68] sm:$0xff]  ;;  %vm2181_vm4 = vcmask 523264  }
  0x84   :  { %v4894_v2 = vand.u32 4294901760, %v78_v63  ;;  %v4896_v3 = vand.u32 4294901760, %v81_v0 }
  0x86   :  { %v161_v4 = vsub.f32 %v78_v63, %v4894_v2  ;;  %v171_v5 = vsub.f32 %v81_v0, %v4896_v3  ;;  %v5006_v63 = vld [vmem:[%s5785_s1 + $0x70] sm:$0xff]  ;;  %v5011_v0 = vld [vmem:[%s5785_s1 + $0x78] sm:$0xff] }
  0x88   :  { %v162_v6 = vand.u32 4294901760, %v161_v4  ;;  %v172_v7 = vand.u32 4294901760, %v171_v5 }
  0x89   :  { %v76_v9 = vld [vmem:[#allocation2 + $0x18] sm:$0xff] }
  0x8a   :  { %v75_v8 = vld [vmem:[#allocation2 + $0x10] sm:$0xff]  ;;  %v163_v10 = vsub.f32 %v161_v4, %v162_v6  ;;  %v173_v11 = vsub.f32 %v171_v5, %v172_v7  ;;  %v87_v13 = vsel %vm16_vm0, %v76_v9, 0 }
  0x8b   :  { %v84_v12 = vsel %vm16_vm0, %v75_v8, 0  ;;  %v190_v16 = vand.u32 4294901760, %v87_v13  ;;  %v5030_v8 = vld [vmem:[%s5785_s1 + $0x88] sm:$0xff]  ;;  %v5035_v9 = vld [vmem:[%s5785_s1 + $0x90] sm:$0xff]  ;;  %vm1489_vm0 = vcmask 780802  }
  0x8c   :  { %v180_v14 = vand.u32 4294901760, %v84_v12  ;;  %v164_v17 = vand.u32 4294901760, %v163_v10  ;;  %v174_v19 = vand.u32 4294901760, %v173_v11 }
  0x8d   :  { %v191_v21 = vsub.f32 %v87_v13, %v190_v16 }
  0x8e   :  { %v181_v20 = vsub.f32 %v84_v12, %v180_v14  ;;  %3582 = vmatprep.mubr.f32.mxu0 %v164_v17 }
  0x8f   :  { %3583 = vmatmul.mubr.f32.vlgmr.msra.gmra.mrb[0].mxu0 %v174_v19  ;;  %v192_v23 = vand.u32 4294901760, %v191_v21  ;;  %v5058_v19 = vsub.f32 %v4949_v31, %v826_v33 }
  0x90   :  { %v182_v22 = vand.u32 4294901760, %v181_v20  ;;  %4245 = vmatpush3.bf16.msra.mxu0 %v4873_v36 }
  0x91   :  { %4247 = vmatprep.subr.bf16.mxu0 %v4246_v42  ;;  %v193_v25 = vsub.f32 %v191_v21, %v192_v23 }
  0x92   :  { %v183_v24 = vsub.f32 %v181_v20, %v182_v22 }
  0x93   :  { %v194_v27 = vand.u32 4294901760, %v193_v25  ;;  %v929_v25 = vand.u32 4294901760, %v5058_v19 }
  0x94   :  { %v184_v26 = vand.u32 4294901760, %v183_v24  ;;  %4249 = vmatpush3.bf16.msra.mxu0 %v4246_v42  ;;  %v4972_v42 = vld [vmem:[%s5785_s1 + $0x50] sm:$0xff] }
  0x95   :  { %4251 = vmatprep.subr.bf16.mxu0 %v4250_v46 }
  0x96   :  { %3585 = vmatprep.mubr.f32.mxu0 %v184_v26 }
  0x97   :  { %3586 = vmatmul.mubr.f32.gmra.mrb[2].mxu0 %v194_v27  ;;  %v930_v27 = vsub.f32 %v5058_v19, %v929_v25 }
  0x98   :  { %3600 = vmatprep.mubr.f32.mxu0 %v4894_v2  ;;  %4253 = vmatpush3.bf16.msra.mxu0 %v4250_v46 }
  0x99   :  { %4255 = vmatprep.subr.bf16.mxu0 %v4878_v47 }
  0x9b   :  { %3601 = vmatmul.mubr.f32.vlgmr.msra.gmra.mrb[0].mxu0 %v4896_v3 }
  0x9c   :  { %3603 = vmatprep.mubr.f32.mxu0 %v180_v14  ;;  %4257 = vmatpush3.bf16.msra.mxu0 %v4878_v47 }
  0x9d   :  { %4259 = vmatprep.subr.bf16.mxu0 %v4880_v48 }
  0x9f   :  { %3604 = vmatmul.mubr.f32.gmra.mrb[2].mxu0 %v190_v16 }
  0xa0   :  { %4261 = vmatpush3.bf16.msra.mxu0 %v4880_v48  ;;  %3618 = vmatprep.mubr.f32.mxu0 %v161_v4  ;;  %v5019_v4 = vld [vmem:[%s5785_s1 + $0x80] sm:$0xff] }
  0xa1   :  { %4263 = vmatprep.subr.bf16.mxu0 %v4882_v49 }
  0xa4   :  { %4265 = vmatpush3.bf16.msra.mxu0 %v4882_v49  ;;  %v832_v49 = vand.u32 4294901760, %v4972_v42 }
  0xa5   :  { %4267 = vmatprep.subr.bf16.mxu0 %v4859_v15 }
  0xa6   :  { %v4979_v53 = vpack.c.bf16 %v832_v49, %v829_v45 }
  0xa7   :  { %3619 = vmatmul.mubr.f32.vlgmr.msra.gmra.mrb[0].mxu0 %v171_v5  ;;  %v847_v5 = vand.u32 4294901760, %v5011_v0 }
  0xa8   :  { %3621 = vmatprep.mubr.f32.mxu0 %v181_v20  ;;  %4269 = vmatpush3.bf16.msra.mxu0 %v4859_v15 }
  0xa9   :  { %4271 = vmatprep.subr.bf16.mxu0 %v4861_v18 }
  0xab   :  { %3622 = vmatmul.mubr.f32.gmra.mrb[2].mxu0 %v191_v21 }
  0xac   :  { %4273 = vmatpush3.bf16.msra.mxu0 %v4861_v18  ;;  %3636 = vmatprep.mubr.f32.mxu0 %v162_v6  ;;  %v850_v6 = vand.u32 4294901760, %v5019_v4 }
  0xad   :  { %4275 = vmatprep.subr.bf16.mxu0 %v4868_v28 }
  0xae   :  { %v5043_v13 = vpack.c.bf16 %v850_v6, %v847_v5 }
  0xb0   :  { %4277 = vmatpush3.bf16.msra.mxu0 %v4868_v28 }
  0xb1   :  { %4279 = vmatprep.subr.bf16.mxu0 %v4884_v50 }
  0xb3   :  { %3637 = vmatmul.mubr.f32.vlgmr.msra.gmra.mrb[0].mxu0 %v172_v7 }
  0xb4   :  { %3639 = vmatprep.mubr.f32.mxu0 %v182_v22  ;;  %4281 = vmatpush3.bf16.msra.mxu0 %v4884_v50 }
  0xb5   :  { %4283 = vmatprep.subr.bf16.mxu0 %v4886_v51 }
  0xb7   :  { %3640 = vmatmul.mubr.f32.gmra.mrb[2].mxu0 %v192_v23 }
  0xb8   :  { %4285 = vmatpush3.bf16.msra.mxu0 %v4886_v51  ;;  %3654 = vmatprep.mubr.f32.mxu0 %v4894_v2 }
  0xb9   :  { %4287 = vmatprep.subr.bf16.mxu0 %v4888_v52 }
  0xbc   :  { %4289 = vmatpush3.bf16.msra.mxu0 %v4888_v52 }
  0xbd   :  { %4291 = vmatprep.subr.bf16.mxu0 %v4859_v15 }
  0xbf   :  { %3655 = vmatmul.mubr.f32.vlgmr.msra.gmra.mrb[0].mxu0 %v4896_v3 }
  0xc0   :  { %3657 = vmatprep.mubr.f32.mxu0 %v180_v14  ;;  %4293 = vmatpush3.bf16.msra.mxu0 %v4859_v15 }
  0xc1   :  { %4295 = vmatprep.subr.bf16.mxu0 %v4861_v18 }
  0xc3   :  { %3658 = vmatmul.mubr.f32.gmra.mrb[2].mxu0 %v190_v16 }
  0xc4   :  { %4297 = vmatpush3.bf16.msra.mxu0 %v4861_v18  ;;  %3672 = vmatprep.mubr.f32.mxu0 %v4894_v2  ;;  %v841_v2 = vand.u32 4294901760, %v5001_v62 }
  0xc5   :  { %4299 = vmatprep.subr.bf16.mxu0 %v4868_v28 }
  0xc8   :  { %4301 = vmatpush3.bf16.msra.mxu0 %v4868_v28  ;;  %v4944_v28 = vld [vmem:[%s5785_s1 + $0x38] sm:$0xff] }
  0xc9   :  { %v823_v32 = vand.u32 4294901760, %v4944_v28 }
  0xcb   :  { %3673 = vmatmul.mubr.f32.vlgmr.msra.gmra.mrb[0].mxu0 %v4896_v3  ;;  %v4957_v34 = vpack.c.bf16 %v826_v33, %v823_v32  ;;  %v844_v3 = vand.u32 4294901760, %v5006_v63  ;;  %v5053_v17 = vsub.f32 %v4944_v28, %v823_v32 }
  0xcc   :  { %3675 = vmatprep.mubr.f32.mxu0 %v180_v14  ;;  %v853_v14 = vand.u32 4294901760, %v5030_v8 }
  0xcd   :  { %4303 = vmatprep.subr.bf16.mxu1 %v4957_v34  ;;  %v5025_v7 = vpack.c.bf16 %v844_v3, %v841_v2  ;;  %v922_v24 = vand.u32 4294901760, %v5053_v17 }
  0xce   :  { %4305 = vmatpush3.bf16.msra.mxu1 %v4957_v34 }
  0xcf   :  { %3676 = vmatmul.mubr.f32.gmra.mrb[2].mxu0 %v190_v16  ;;  %4307 = vmatprep.subr.bf16.mxu1 %v4979_v53  ;;  %v856_v16 = vand.u32 4294901760, %v5035_v9  ;;  %v923_v26 = vsub.f32 %v5053_v17, %v922_v24 }
  0xd0   :  { %3872 = vmatprep.mubr.msk.f32.mxu0 %vm4798_vm11, %v4792_v1 }
  0xd1   :  { %v5062_v23 = vpack.c.bf16 %v856_v16, %v853_v14 }
  0xd2   :  { %4309 = vmatpush3.bf16.msra.mxu1 %v4979_v53 }
  0xd3   :  { %4311 = vmatprep.subr.bf16.mxu1 %v4996_v61 }
  0xd6   :  { %4313 = vmatpush3.bf16.msra.mxu1 %v4996_v61 }
  0xd7   :  { %4315 = vmatprep.subr.bf16.mxu1 %v5025_v7 }
  0xda   :  { %4317 = vmatpush3.bf16.msra.mxu1 %v5025_v7 }
  0xdb   :  { %4319 = vmatprep.subr.bf16.mxu1 %v5043_v13 }
  0xde   :  { %4321 = vmatpush3.bf16.msra.mxu1 %v5043_v13 }
  0xdf   :  { %4323 = vmatprep.subr.bf16.mxu1 %v5062_v23 }
  0xe2   :  { %4325 = vmatpush3.bf16.msra.mxu1 %v5062_v23 }
 0x19e   :  { %v3674_v29 = vpop.f32.mrb[0].mxu0 }
 0x19f   :  { %735 = vrot.lane.b32.xlu1 %v3674_v29, %s4795_s30  ;;  %v707_v15 = vpop.f32.mrb[1].mxu0 }
 0x1a0   :  { %733 = vrot.lane.b32.xlu0 %v707_v15, %s4795_s30 }
 0x1a2   :  { %v3677_v30 = vpop.f32.mrb[2].mxu0 }
 0x1a3   :  { %739 = vrot.lane.b32.xlu1 %v3677_v30, %s4795_s30  ;;  %v719_v18 = vpop.f32.mrb[3].mxu0 }
 0x1a4   :  { %737 = vrot.lane.b32.xlu0 %v719_v18, %s4795_s30 }
 0x211   :  { %v736_v36 = vpop.permute.xlu1 %735 }
 0x212   :  { %v746_v37 = vmax.f32 %v3674_v29, %v736_v36  ;;  %v734_v38 = vpop.permute.xlu0 %733  ;;  %v5079_v29 = vsub.f32 %v4967_v41, %v829_v45  ;;  %v5097_v36 = vsub.f32 %v4984_v54, %v835_v57  ;;  %v5114_v45 = vsub.f32 %v5001_v62, %v841_v2 }
 0x213   :  { %v745_v39 = vmax.f32 %v707_v15, %v734_v38  ;;  %v5082_v15 = vsub.f32 %v4972_v42, %v832_v49  ;;  %v5127_v54 = vsub.f32 %v5011_v0, %v847_v5  ;;  %v5146_v0 = vsub.f32 %v5030_v8, %v853_v14 }
 0x214   :  { %v754_v40 = vadd.f32 %v3235_v35, %v746_v37  ;;  %v936_v28 = vand.u32 4294901760, %v5079_v29  ;;  %v5100_v37 = vsub.f32 %v4989_v55, %v838_v58  ;;  %v964_v49 = vand.u32 4294901760, %v5114_v45 }
 0x215   :  { %v753_v43 = vadd.f32 %v3235_v35, %v745_v39  ;;  %v740_v44 = vpop.permute.xlu1 %739  ;;  %v943_v31 = vand.u32 4294901760, %v5082_v15  ;;  %v5132_v55 = vsub.f32 %v5019_v4, %v850_v6  ;;  %v978_v58 = vand.u32 4294901760, %v5127_v54 }
 0x216   :  { %v758_v46 = vmax.f32 %v754_v40, 0.0  ;;  %v748_v47 = vmax.f32 %v3677_v30, %v740_v44  ;;  %v738_v48 = vpop.permute.xlu0 %737  ;;  %v924_v30 = vand.u32 4294901760, %v923_v26  ;;  %v937_v33 = vsub.f32 %v5079_v29, %v936_v28 }
 0x217   :  { %v757_v50 = vmax.f32 %v753_v43, 0.0  ;;  %v747_v51 = vmax.f32 %v719_v18, %v738_v48  ;;  %v931_v18 = vand.u32 4294901760, %v930_v27  ;;  %v950_v40 = vand.u32 4294901760, %v5097_v36 }
 0x218   :  { %763 = vst.msk [vmem:[#allocation3 + $0x8] sm:$0xff] %vm761_vm7, %v758_v46  ;;  %v756_v52 = vadd.f32 %v3235_v35, %v748_v47  ;;  %v938_v38 = vand.u32 4294901760, %v937_v33  ;;  %v957_v41 = vand.u32 4294901760, %v5100_v37  ;;  %v5117_v46 = vsub.f32 %v5006_v63, %v844_v3 }
 0x219   :  { %762 = vst.msk [vmem:[#allocation3] sm:$0xff] %vm761_vm7, %v757_v50  ;;  %v755_v56 = vadd.f32 %v3235_v35, %v747_v51  ;;  %v5087_v32 = vpack.c.bf16 %v931_v18, %v924_v30  ;;  %v944_v35 = vsub.f32 %v5082_v15, %v943_v31  ;;  %v951_v43 = vsub.f32 %v5097_v36, %v950_v40 }
 0x21a   :  { %v760_v59 = vmax.f32 %v756_v52, 0.0  ;;  %v958_v44 = vsub.f32 %v5100_v37, %v957_v41  ;;  %v971_v50 = vand.u32 4294901760, %v5117_v46  ;;  %v965_v52 = vsub.f32 %v5114_v45, %v964_v49 }
 0x21b   :  { %v759_v60 = vmax.f32 %v755_v56, 0.0  ;;  %4327 = vmatprep.subr.bf16.mxu1 %v5087_v32  ;;  %v945_v39 = vand.u32 4294901760, %v944_v35  ;;  %v952_v47 = vand.u32 4294901760, %v951_v43  ;;  %v979_v62 = vsub.f32 %v5127_v54, %v978_v58 }
 0x21c   :  { %765 = vst.msk [vmem:[#allocation3 + $0x18] sm:$0xff] %vm761_vm7, %v760_v59  ;;  %v959_v48 = vand.u32 4294901760, %v958_v44  ;;  %v972_v56 = vsub.f32 %v5117_v46, %v971_v50  ;;  %v966_v57 = vand.u32 4294901760, %v965_v52  ;;  %v985_v59 = vand.u32 4294901760, %v5132_v55 }
 0x21d   :  { %764 = vst.msk [vmem:[#allocation3 + $0x10] sm:$0xff] %vm761_vm7, %v759_v60  ;;  %v5105_v42 = vpack.c.bf16 %v945_v39, %v938_v38  ;;  %v5149_v2 = vsub.f32 %v5035_v9, %v856_v16  ;;  %v980_v4 = vand.u32 4294901760, %v979_v62  ;;  %v992_v6 = vand.u32 4294901760, %v5146_v0 }
 0x21e   :  { %v4334_v51 = vpack.c.bf16 %v959_v48, %v952_v47  ;;  %v973_v60 = vand.u32 4294901760, %v972_v56  ;;  %v986_v63 = vsub.f32 %v5132_v55, %v985_v59  ;;  %v4350_v16 = vpack.c.bf16 %v5058_v19, %v5053_v17 }
 0x21f   :  { %v4362_v26 = vpack.c.bf16 %v5117_v46, %v5114_v45  ;;  %v4366_v27 = vpack.c.bf16 %v5132_v55, %v5127_v54  ;;  %v4370_v30 = vpack.c.bf16 %v5149_v2, %v5146_v0  ;;  %v4406_v17 = vpack.c.bf16 %v957_v41, %v950_v40 }
 0x220   :  { %v766_v10 = vld [vmem:[#allocation3] ss:$2 sm:$0xff]  ;;  %v770_v11 = vld [vmem:[#allocation3 + $0x1] ss:$2 sm:$0xff]  ;;  %v4338_v3 = vpack.c.bf16 %v973_v60, %v966_v57  ;;  %v987_v5 = vand.u32 4294901760, %v986_v63  ;;  %v4410_v19 = vpack.c.bf16 %v971_v50, %v964_v49 }
 0x221   :  { %v773_v12 = vmax.f32 %v766_v10, %v770_v11  ;;  %v999_v10 = vand.u32 4294901760, %v5149_v2 }
 0x222   :  { %v4342_v11 = vpack.c.bf16 %v987_v5, %v980_v4 }
 0x223   :  { %786 = vrot.lane.b32.xlu1 %v773_v12, %s4796_s29  ;;  %781 = vrot.lane.b32.xlu0 %v773_v12, %s4793_s11  ;;  %779 = vst.msk [vmem:[#allocation4 + $0x1] sm:$0x7f] %vm778_vm8, %v773_v12  ;;  %v993_v12 = vsub.f32 %v5146_v0, %v992_v6  ;;  %v1000_v8 = vsub.f32 %v5149_v2, %v999_v10  ;;  %v3236_v2 = vld [vmem:[%s5785_s1 + $0x98] ss:$0 sm:$0xff] }
 0x224   :  { %v768_v20 = vld [vmem:[#allocation3 + $0x10] ss:$2 sm:$0xff]  ;;  %v772_v21 = vld [vmem:[#allocation3 + $0x11] ss:$2 sm:$0xff] }
 0x225   :  { %v774_v22 = vmax.f32 %v768_v20, %v772_v21  ;;  %v994_v14 = vand.u32 4294901760, %v993_v12  ;;  %v1001_v20 = vand.u32 4294901760, %v1000_v8  ;;  %v4354_v21 = vpack.c.bf16 %v5082_v15, %v5079_v29  ;;  %v1511_v8 = vld [vmem:[%s5785_s1 + $0xd0] sm:$0xff] }
 0x227   :  { %797 = vrot.lane.b32.xlu1 %v774_v22, %s4796_s29  ;;  %793 = vrot.lane.b32.xlu0 %v774_v22, %s4793_s11  ;;  %791 = vst.msk [vmem:[#allocation4 + $0x9] sm:$0x7f] %vm778_vm8, %v774_v22  ;;  %v4346_v9 = vpack.c.bf16 %v1001_v20, %v994_v14  ;;  %v4358_v22 = vpack.c.bf16 %v5100_v37, %v5097_v36  ;;  %v1509_v36 = vld [vmem:[%s5785_s1 + $0xc0] sm:$0xff]  ;;  %v1510_v37 = vld [vmem:[%s5785_s1 + $0xc8] sm:$0xff] }
 0x228   :  { %v1539_v41 = vand.u32 4294901760, %v1509_v36  ;;  %v1542_v45 = vand.u32 4294901760, %v1510_v37  ;;  %v1512_v14 = vld [vmem:[%s5785_s1 + $0xd8] sm:$0xff] }
 0x22a   :  { %v5268_v55 = vsub.f32 %v1509_v36, %v1539_v41  ;;  %v5277_v0 = vpack.c.bf16 %v1542_v45, %v1539_v41 }
 0x295   :  { %v787_v18 = vpop.permute.xlu1 %786  ;;  %v782_v33 = vpop.permute.xlu0 %781 }
 0x296   :  { %785 = vst.msk [vmem:[#allocation4] sm:$0xff] %vm784_vm9, %v782_v33  ;;  %v1513_v33 = vld [vmem:[%s5785_s1 + $0xe0] sm:$0xff] }
 0x297   :  { %790 = vst.msk [vmem:[#allocation4 - $0x1] sm:$0xfe] %vm789_vm10, %v787_v18 }
 0x299   :  { %v798_v35 = vpop.permute.xlu1 %797  ;;  %v794_v38 = vpop.permute.xlu0 %793 }
 0x29a   :  { %796 = vst.msk [vmem:[#allocation4 + $0x8] sm:$0xff] %vm784_vm9, %v794_v38  ;;  %v1551_v38 = vand.u32 4294901760, %v1513_v33 }
 0x29b   :  { %800 = vst.msk [vmem:[#allocation4 + $0x7] sm:$0xfe] %vm789_vm10, %v798_v35  ;;  %v1514_v35 = vld [vmem:[%s5785_s1 + $0xe8] sm:$0xff] }
 0x29e   :  { %v814_v39 = vld [vmem:[#allocation4] sm:$0xff] }
 0x29f   :  { %v817_v43 = vsel %vm775_vm6, %v814_v39, 0  ;;  %v1554_v39 = vand.u32 4294901760, %v1514_v35 }
 0x2a0   :  { %v5172_v44 = vand.u32 4294901760, %v817_v43 }
 0x2a2   :  { %v900_v47 = vsub.f32 %v817_v43, %v5172_v44  ;;  %v815_v48 = vld [vmem:[#allocation4 + $0x8] sm:$0xff]  ;;  %v5307_v43 = vpack.c.bf16 %v1554_v39, %v1551_v38 }
 0x2a3   :  { %v820_v52 = vsel %vm775_vm6, %v815_v48, 0  ;;  %v1515_v48 = vld [vmem:[%s5785_s1 + $0xf0] sm:$0xff] }
 0x2a4   :  { %v901_v56 = vand.u32 4294901760, %v900_v47  ;;  %v5176_v57 = vand.u32 4294901760, %v820_v52 }
 0x2a6   :  { %v902_v60 = vsub.f32 %v900_v47, %v901_v56  ;;  %v910_v62 = vsub.f32 %v820_v52, %v5176_v57  ;;  %v1516_v52 = vld [vmem:[%s5785_s1 + $0xf8] sm:$0xff] }
 0x2a8   :  { %v903_v63 = vand.u32 4294901760, %v902_v60  ;;  %v911_v4 = vand.u32 4294901760, %v910_v62  ;;  %v1560_v60 = vand.u32 4294901760, %v1516_v52 }
 0x2aa   :  { %3702 = vmatprep.mubr.f32.mxu1 %v903_v63  ;;  %v912_v5 = vsub.f32 %v910_v62, %v911_v4 }
 0x2ac   :  { %v913_v12 = vand.u32 4294901760, %v912_v5  ;;  %v1520_v5 = vld [vmem:[%s5785_s1 + $0x118] sm:$0xff] }
 0x2ae   :  { %3703 = vmatmul.mubr.f32.vlgmr.msra.gmra.mrb[0].mxu1 %v913_v12 }
 0x2af   :  { %4329 = vmatpush3.bf16.msra.mxu1 %v5087_v32  ;;  %3729 = vmatprep.mubr.f32.mxu1 %v5172_v44  ;;  %v4398_v32 = vpack.c.bf16 %v929_v25, %v922_v24  ;;  %v4414_v24 = vpack.c.bf16 %v985_v59, %v978_v58  ;;  %v4418_v25 = vpack.c.bf16 %v999_v10, %v992_v6 }
 0x2b0   :  { %4331 = vmatprep.subr.bf16.mxu1 %v5105_v42  ;;  %v5273_v59 = vsub.f32 %v1510_v37, %v1542_v45 }
 0x2b3   :  { %4333 = vmatpush3.bf16.msra.mxu1 %v5105_v42  ;;  %v4402_v42 = vpack.c.bf16 %v943_v31, %v936_v28  ;;  %v1508_v28 = vld [vmem:[%s5785_s1 + $0xb8] sm:$0xff] }
 0x2b4   :  { %4335 = vmatprep.subr.bf16.mxu1 %v4334_v51  ;;  %v1536_v40 = vand.u32 4294901760, %v1508_v28 }
 0x2b6   :  { %v5266_v54 = vsub.f32 %v1508_v28, %v1536_v40 }
 0x2b7   :  { %4337 = vmatpush3.bf16.msra.mxu1 %v4334_v51 }
 0x2b8   :  { %4339 = vmatprep.subr.bf16.mxu1 %v4338_v3 }
 0x2bb   :  { %4341 = vmatpush3.bf16.msra.mxu1 %v4338_v3 }
 0x2bc   :  { %4343 = vmatprep.subr.bf16.mxu1 %v4342_v11 }
 0x2bf   :  { %4345 = vmatpush3.bf16.msra.mxu1 %v4342_v11 }
 0x2c0   :  { %4347 = vmatprep.subr.bf16.mxu1 %v4346_v9 }
 0x2c3   :  { %4349 = vmatpush3.bf16.msra.mxu1 %v4346_v9  ;;  %v1545_v9 = vand.u32 4294901760, %v1511_v8 }
 0x2c4   :  { %4351 = vmatprep.subr.bf16.mxu1 %v4350_v16 }
 0x2c6   :  { %3730 = vmatmul.mubr.f32.vlgmr.msra.gmra.mrb[0].mxu1 %v5176_v57 }
 0x2c7   :  { %4353 = vmatpush3.bf16.msra.mxu1 %v4350_v16  ;;  %3756 = vmatprep.mubr.f32.mxu1 %v900_v47  ;;  %v1548_v16 = vand.u32 4294901760, %v1512_v14  ;;  %v5311_v47 = vsub.f32 %v1514_v35, %v1554_v39 }
 0x2c8   :  { %4355 = vmatprep.subr.bf16.mxu1 %v4354_v21 }
 0x2cb   :  { %4357 = vmatpush3.bf16.msra.mxu1 %v4354_v21 }
 0x2cc   :  { %4359 = vmatprep.subr.bf16.mxu1 %v4358_v22 }
 0x2cf   :  { %4361 = vmatpush3.bf16.msra.mxu1 %v4358_v22 }
 0x2d0   :  { %4363 = vmatprep.subr.bf16.mxu1 %v4362_v26 }
 0x2d3   :  { %4365 = vmatpush3.bf16.msra.mxu1 %v4362_v26  ;;  %v5291_v26 = vpack.c.bf16 %v1548_v16, %v1545_v9 }
 0x2d4   :  { %4367 = vmatprep.subr.bf16.mxu1 %v4366_v27 }
 0x2d7   :  { %4369 = vmatpush3.bf16.msra.mxu1 %v4366_v27  ;;  %v5293_v27 = vsub.f32 %v1511_v8, %v1545_v9  ;;  %v1655_v9 = vand.u32 4294901760, %v5273_v59 }
 0x2d8   :  { %4371 = vmatprep.subr.bf16.mxu1 %v4370_v30 }
 0x2d9   :  { %v1662_v35 = vand.u32 4294901760, %v5293_v27 }
 0x2db   :  { %4373 = vmatpush3.bf16.msra.mxu1 %v4370_v30  ;;  %v5295_v30 = vsub.f32 %v1512_v14, %v1548_v16 }
 0x2dc   :  { %4375 = vmatprep.subr.bf16.mxu1 %v4957_v34 }
 0x2de   :  { %3757 = vmatmul.mubr.f32.vlgmr.msra.gmra.mrb[0].mxu1 %v910_v62  ;;  %v1518_v62 = vld [vmem:[%s5785_s1 + $0x108] sm:$0xff] }
 0x2df   :  { %4377 = vmatpush3.bf16.msra.mxu1 %v4957_v34  ;;  %3783 = vmatprep.mubr.f32.mxu1 %v901_v56  ;;  %v1517_v56 = vld [vmem:[%s5785_s1 + $0x100] sm:$0xff]  ;;  %v1566_v12 = vand.u32 4294901760, %v1518_v62 }
 0x2e0   :  { %4379 = vmatprep.subr.bf16.mxu1 %v4979_v53  ;;  %v1563_v63 = vand.u32 4294901760, %v1517_v56 }
 0x2e3   :  { %4381 = vmatpush3.bf16.msra.mxu1 %v4979_v53 }
 0x2e4   :  { %4383 = vmatprep.subr.bf16.mxu1 %v4996_v61 }
 0x2e7   :  { %4385 = vmatpush3.bf16.msra.mxu1 %v4996_v61 }
 0x2e8   :  { %4387 = vmatprep.subr.bf16.mxu1 %v5025_v7 }
 0x2eb   :  { %4389 = vmatpush3.bf16.msra.mxu1 %v5025_v7 }
 0x2ec   :  { %4391 = vmatprep.subr.bf16.mxu1 %v5043_v13 }
 0x2ef   :  { %4393 = vmatpush3.bf16.msra.mxu1 %v5043_v13 }
 0x2f0   :  { %4395 = vmatprep.subr.bf16.mxu1 %v5062_v23 }
 0x2f3   :  { %4397 = vmatpush3.bf16.msra.mxu1 %v5062_v23 }
 0x2f4   :  { %4399 = vmatprep.subr.bf16.mxu1 %v4398_v32 }
 0x2f6   :  { %3784 = vmatmul.mubr.f32.vlgmr.msra.gmra.mrb[0].mxu1 %v911_v4  ;;  %v1519_v4 = vld [vmem:[%s5785_s1 + $0x110] sm:$0xff] }
 0x2f7   :  { %4401 = vmatpush3.bf16.msra.mxu1 %v4398_v32  ;;  %3810 = vmatprep.mubr.f32.mxu1 %v5172_v44  ;;  %v1569_v32 = vand.u32 4294901760, %v1519_v4 }
 0x2f8   :  { %4403 = vmatprep.subr.bf16.mxu1 %v4402_v42 }
 0x2fb   :  { %4405 = vmatpush3.bf16.msra.mxu1 %v4402_v42  ;;  %v1572_v42 = vand.u32 4294901760, %v1520_v5 }
 0x2fc   :  { %4407 = vmatprep.subr.bf16.mxu1 %v4406_v17 }
 0x2fd   :  { %v5358_v28 = vpack.c.bf16 %v1572_v42, %v1569_v32 }
 0x2ff   :  { %4409 = vmatpush3.bf16.msra.mxu1 %v4406_v17 }
 0x300   :  { %4411 = vmatprep.subr.bf16.mxu1 %v4410_v19 }
 0x303   :  { %4413 = vmatpush3.bf16.msra.mxu1 %v4410_v19 }
 0x304   :  { %4415 = vmatprep.subr.bf16.mxu1 %v4414_v24 }
 0x307   :  { %4417 = vmatpush3.bf16.msra.mxu1 %v4414_v24  ;;  %v5341_v24 = vsub.f32 %v1516_v52, %v1560_v60 }
 0x308   :  { %4419 = vmatprep.subr.bf16.mxu1 %v4418_v25 }
 0x30b   :  { %4421 = vmatpush3.bf16.msra.mxu1 %v4418_v25  ;;  %v5343_v25 = vsub.f32 %v1517_v56, %v1563_v63 }
 0x30c   :  { %4423 = vmatprep.subr.bf16.mxu1 %v4957_v34 }
 0x30e   :  { %3811 = vmatmul.mubr.f32.vlgmr.msra.gmra.mrb[0].mxu1 %v5176_v57 }
 0x30f   :  { %4425 = vmatpush3.bf16.msra.mxu1 %v4957_v34  ;;  %3837 = vmatprep.mubr.f32.mxu1 %v5172_v44  ;;  %v5309_v44 = vsub.f32 %v1513_v33, %v1551_v38  ;;  %v1669_v38 = vand.u32 4294901760, %v5295_v30 }
 0x310   :  { %4427 = vmatprep.subr.bf16.mxu1 %v4979_v53 }
 0x311   :  { %v1670_v52 = vsub.f32 %v5295_v30, %v1669_v38 }
 0x313   :  { %4429 = vmatpush3.bf16.msra.mxu1 %v4979_v53 }
 0x314   :  { %4431 = vmatprep.subr.bf16.mxu1 %v4996_v61 }
 0x317   :  { %4433 = vmatpush3.bf16.msra.mxu1 %v4996_v61  ;;  %v1505_v61 = vld [vmem:[%s5785_s1 + $0xa0] sm:$0xff] }
 0x318   :  { %4435 = vmatprep.subr.bf16.mxu1 %v5025_v7  ;;  %v1527_v29 = vand.u32 4294901760, %v1505_v61 }
 0x31a   :  { %v5260_v49 = vsub.f32 %v1505_v61, %v1527_v29  ;;  %v5349_v61 = vsub.f32 %v1520_v5, %v1572_v42 }
 0x31b   :  { %4437 = vmatpush3.bf16.msra.mxu1 %v5025_v7  ;;  %v1506_v7 = vld [vmem:[%s5785_s1 + $0xa8] sm:$0xff] }
 0x31c   :  { %4439 = vmatprep.subr.bf16.mxu1 %v5043_v13  ;;  %v1530_v15 = vand.u32 4294901760, %v1506_v7 }
 0x31e   :  { %v5258_v46 = vpack.c.bf16 %v1530_v15, %v1527_v29  ;;  %v5262_v50 = vsub.f32 %v1506_v7, %v1530_v15  ;;  %v5352_v29 = vpack.c.bf16 %v1566_v12, %v1563_v63 }
 0x31f   :  { %4441 = vmatpush3.bf16.msra.mxu1 %v5043_v13  ;;  %v1507_v13 = vld [vmem:[%s5785_s1 + $0xb0] sm:$0xff] }
 0x320   :  { %4443 = vmatprep.subr.bf16.mxu1 %v5062_v23  ;;  %v1533_v31 = vand.u32 4294901760, %v1507_v13  ;;  %v1627_v36 = vand.u32 4294901760, %v5262_v50 }
 0x322   :  { %v5264_v51 = vsub.f32 %v1507_v13, %v1533_v31  ;;  %v5271_v58 = vpack.c.bf16 %v1536_v40, %v1533_v31  ;;  %v1620_v31 = vand.u32 4294901760, %v5260_v49  ;;  %v1628_v40 = vsub.f32 %v5262_v50, %v1627_v36 }
 0x323   :  { %4445 = vmatpush3.bf16.msra.mxu1 %v5062_v23  ;;  %v4797_v23 = vmov 0.0|0.0  }
 0x324   :  { %4446 = vmatprep.subr.bf16.mxu0 %v4797_v23  ;;  %4602 = vmatprep.subr.bf16.mxu1 %v4797_v23  ;;  %v1621_v37 = vsub.f32 %v5260_v49, %v1620_v31  ;;  %v1629_v45 = vand.u32 4294901760, %v1628_v40 }
 0x325   :  { %4448 = vmatpush3.bf16.msra.mxu0 %v5258_v46 }
 0x326   :  { %3838 = vmatmul.mubr.f32.vlgmr.msra.gmra.mrb[0].mxu1 %v5176_v57  ;;  %4449 = vmatprep.subr.bf16.mxu0 %v4797_v23  ;;  %v1557_v57 = vand.u32 4294901760, %v1515_v48  ;;  %v1622_v41 = vand.u32 4294901760, %v1621_v37 }
 0x327   :  { %4085 = vmatprep.mubr.msk.f32.mxu1 %vm4798_vm11, %v4792_v1 }
 0x328   :  { %v5337_v17 = vpack.c.bf16 %v1560_v60, %v1557_v57  ;;  %v5339_v19 = vsub.f32 %v1515_v48, %v1557_v57  ;;  %v1663_v48 = vsub.f32 %v5293_v27, %v1662_v35  ;;  %v1671_v57 = vand.u32 4294901760, %v1670_v52 }
 0x329   :  { %4451 = vmatpush3.bf16.msra.mxu0 %v5271_v58  ;;  %v1676_v60 = vand.u32 4294901760, %v5309_v44 }
 0x32a   :  { %4452 = vmatprep.subr.bf16.mxu0 %v4797_v23  ;;  %v1664_v56 = vand.u32 4294901760, %v1663_v48  ;;  %v5796_v42 = vand.u32 4294901760, %v5339_v19 }
 0x32c   :  { %v5404_v63 = vpack.c.bf16 %v1671_v57, %v1664_v56 }
 0x32d   :  { %4454 = vmatpush3.bf16.msra.mxu0 %v5277_v0 }
 0x32e   :  { %4455 = vmatprep.subr.bf16.mxu0 %v4797_v23 }
 0x331   :  { %4457 = vmatpush3.bf16.msra.mxu0 %v5291_v26 }
 0x332   :  { %4458 = vmatprep.subr.bf16.mxu0 %v4797_v23 }
 0x335   :  { %4460 = vmatpush3.bf16.msra.mxu0 %v5307_v43 }
 0x336   :  { %4461 = vmatprep.subr.bf16.mxu0 %v4797_v23 }
 0x339   :  { %4463 = vmatpush3.bf16.msra.mxu0 %v5337_v17 }
 0x33a   :  { %4464 = vmatprep.subr.bf16.mxu0 %v4797_v23 }
 0x33d   :  { %4466 = vmatpush3.bf16.msra.mxu0 %v5352_v29 }
 0x33e   :  { %4467 = vmatprep.subr.bf16.mxu0 %v4797_v23 }
 0x341   :  { %4469 = vmatpush3.bf16.msra.mxu0 %v5358_v28 }
 0x342   :  { %4470 = vmatprep.subr.bf16.mxu0 %v4797_v23 }
 0x3f9   :  { %v3839_v34 = vpop.f32.mrb[0].mxu1 }
 0x3fa   :  { %1458 = vrot.lane.b32.xlu1 %v3839_v34, %s4795_s30  ;;  %v1444_v53 = vpop.f32.mrb[1].mxu1 }
 0x3fb   :  { %1456 = vrot.lane.b32.xlu0 %v1444_v53, %s4795_s30 }
 0x46c   :  { %v1459_v3 = vpop.permute.xlu1 %1458 }
 0x46d   :  { %v1463_v6 = vmax.f32 %v3839_v34, %v1459_v3  ;;  %v1457_v10 = vpop.permute.xlu0 %1456  ;;  %v5345_v34 = vsub.f32 %v1518_v62, %v1566_v12  ;;  %v1641_v3 = vand.u32 4294901760, %v5266_v54  ;;  %v5798_v62 = vand.u32 4294901760, %v5311_v47 }
 0x46e   :  { %v1462_v11 = vmax.f32 %v1444_v53, %v1457_v10  ;;  %v5347_v53 = vsub.f32 %v1519_v4, %v1569_v32  ;;  %v1677_v4 = vsub.f32 %v5309_v44, %v1676_v60 }
 0x46f   :  { %v1469_v20 = vadd.f32 %v3236_v2, %v1463_v6  ;;  %v5374_v6 = vpack.c.bf16 %v1629_v45, %v1622_v41  ;;  %v1684_v5 = vsub.f32 %v5311_v47, %v5798_v62  ;;  %v5794_v45 = vand.u32 4294901760, %v5343_v25 }
 0x470   :  { %v1468_v21 = vadd.f32 %v3236_v2, %v1462_v11  ;;  %v1634_v2 = vand.u32 4294901760, %v5264_v51  ;;  %v1642_v11 = vsub.f32 %v5266_v54, %v1641_v3  ;;  %v1678_v12 = vand.u32 4294901760, %v1677_v4 }
 0x471   :  { %v1471_v22 = vmax.f32 %v1469_v20, 0.0  ;;  %v1648_v20 = vand.u32 4294901760, %v5268_v55  ;;  %v1685_v32 = vand.u32 4294901760, %v1684_v5 }
 0x472   :  { %v1470_v18 = vmax.f32 %v1468_v21, 0.0  ;;  %v1635_v10 = vsub.f32 %v5264_v51, %v1634_v2  ;;  %v1643_v14 = vand.u32 4294901760, %v1642_v11 }
 0x473   :  { %1473 = vst.msk [vmem:[#allocation5 + $0x8] sm:$0xff] %vm761_vm7, %v1471_v22  ;;  %v1649_v21 = vsub.f32 %v5268_v55, %v1648_v20  ;;  %v1656_v22 = vsub.f32 %v5273_v59, %v1655_v9 }
 0x474   :  { %1472 = vst.msk [vmem:[#allocation5] sm:$0xff] %vm761_vm7, %v1470_v18  ;;  %v1636_v8 = vand.u32 4294901760, %v1635_v10  ;;  %v5793_v10 = vand.u32 4294901760, %v5345_v34 }
 0x475   :  { %v1650_v18 = vand.u32 4294901760, %v1649_v21  ;;  %v1657_v33 = vand.u32 4294901760, %v1656_v22 }
 0x476   :  { %v5384_v16 = vpack.c.bf16 %v1643_v14, %v1636_v8  ;;  %v1705_v8 = vsub.f32 %v5343_v25, %v5794_v45  ;;  %v1712_v14 = vsub.f32 %v5345_v34, %v5793_v10 }
 0x477   :  { %v5394_v39 = vpack.c.bf16 %v1657_v33, %v1650_v18  ;;  %v5788_v18 = vand.u32 4294901760, %v5347_v53  ;;  %v5787_v33 = vand.u32 4294901760, %v5349_v61 }
 0x478   :  { %v1706_v21 = vand.u32 4294901760, %v1705_v8  ;;  %v1713_v22 = vand.u32 4294901760, %v1712_v14  ;;  %v4513_v8 = vpack.c.bf16 %v5345_v34, %v5343_v25  ;;  %v4516_v14 = vpack.c.bf16 %v5349_v61, %v5347_v53 }
 0x479   :  { %v1719_v52 = vsub.f32 %v5347_v53, %v5788_v18  ;;  %v1726_v56 = vsub.f32 %v5349_v61, %v5787_v33 }
 0x47a   :  { %v4489_v48 = vpack.c.bf16 %v1713_v22, %v1706_v21 }
 0x47b   :  { %v1474_v7 = vld [vmem:[#allocation5] ss:$2 sm:$0xff]  ;;  %v1476_v13 = vld [vmem:[#allocation5 + $0x1] ss:$2 sm:$0xff]  ;;  %v1720_v57 = vand.u32 4294901760, %v1719_v52  ;;  %v1727_v4 = vand.u32 4294901760, %v1726_v56 }
 0x47c   :  { %v1477_v15 = vmax.f32 %v1474_v7, %v1476_v13  ;;  %v5795_v7 = vand.u32 4294901760, %v5341_v24  ;;  %v4483_v13 = vpack.c.bf16 %v1685_v32, %v1678_v12  ;;  %v4495_v12 = vpack.c.bf16 %v5262_v50, %v5260_v49 }
 0x47d   :  { %v4492_v5 = vpack.c.bf16 %v1727_v4, %v1720_v57  ;;  %v4498_v32 = vpack.c.bf16 %v5266_v54, %v5264_v51  ;;  %v4549_v49 = vpack.c.bf16 %v1655_v9, %v1648_v20  ;;  %v4552_v50 = vpack.c.bf16 %v1669_v38, %v1662_v35 }
 0x47e   :  { %1486 = vrot.lane.b32.xlu1 %v1477_v15, %s4796_s29  ;;  %1481 = vrot.lane.b32.xlu0 %v1477_v15, %s4793_s11  ;;  %1479 = vst.msk [vmem:[#allocation6] sm:$0x1] %vm1478_vm12, %v1477_v15  ;;  %v1698_v37 = vsub.f32 %v5341_v24, %v5795_v7  ;;  %v5800_v51 = vand.u32 4294901760, %v5311_v47 }
 0x47f   :  { %1497 = vst.msk [vmem:[#allocation6 - $0x3] sm:$0x10] %vm1496_vm13, %v1477_v15 }
 0x480   :  { %v1699_v41 = vand.u32 4294901760, %v1698_v37  ;;  %v4504_v37 = vpack.c.bf16 %v5295_v30, %v5293_v27  ;;  %v4555_v54 = vpack.c.bf16 %v5800_v51, %v1676_v60  ;;  %v5803_v27 = vand.u32 4294901760, %v5343_v25 }
 0x481   :  { %v5804_v30 = vand.u32 4294901760, %v5345_v34 }
 0x482   :  { %1491 = vrot.lane.b32.xlu0 %v1477_v15, %s4795_s30  ;;  %v1691_v15 = vsub.f32 %v5339_v19, %v5796_v42  ;;  %s4799_s30 = smov [#allocation7]  }
 0x483   :  { %s3227_s29 = sshll.u32 %s4799_s30, 4  ;;  %s3228_s29 = int_to_ptr.vmem [resolvable:$true] %s3227_s29 }
 0x484   :  { %v1692_v40 = vand.u32 4294901760, %v1691_v15  ;;  %v4501_v15 = vpack.c.bf16 %v5273_v59, %v5268_v55  ;;  %v5801_v55 = vand.u32 4294901760, %v5339_v19  ;;  %v5802_v59 = vand.u32 4294901760, %v5341_v24  ;;  %s4768_s12 = scalar_lea.vmem %s3228_s29, 32  ;;  %p4773_p1 = scmp.lt.s32.totalorder %s3228_s29, %s3228_s29 }
 0x485   :  { %p4769_p0 = scmp.ne.s32.totalorder %s3228_s29, %s4768_s12  ;;  %p4774_p2 = scmp.lt.s32.totalorder %s4768_s12, %s4768_s12 }
 0x486   :  { %v4486_v11 = vpack.c.bf16 %v1699_v41, %v1692_v40  ;;  %v4507_v40 = vpack.c.bf16 %v5311_v47, %v5309_v44  ;;  %v4510_v41 = vpack.c.bf16 %v5341_v24, %v5339_v19  ;;  %v5805_v44 = vand.u32 4294901760, %v5347_v53  ;;  %v2174_v19 = vld [vmem:[%s5785_s1 + $0x158] sm:$0xff]  ;;  %v2175_v24 = vld [vmem:[%s5785_s1 + $0x160] sm:$0xff] }
 0x487   :  { %v5806_v47 = vand.u32 4294901760, %v5349_v61  ;;  %v2204_v53 = vand.u32 4294901760, %v2174_v19  ;;  %v2207_v61 = vand.u32 4294901760, %v2175_v24  ;;  %p4775_p3 = por %p4774_p2, %p4773_p1 }
 0x489   :  { %v2319_v20 = vsub.f32 %v2175_v24, %v2207_v61  ;;  %p4776_p4 = pnand %p4775_p3, %p4769_p0 }
 0x48b   :  { %v2320_v60 = vand.u32 4294901760, %v2319_v20 }
 0x4f0   :  { %v1487_v21 = vpop.permute.xlu1 %1486  ;;  %v1482_v22 = vpop.permute.xlu0 %1481 }
 0x4f1   :  { %1485 = vst.msk [vmem:[#allocation6 - $0x1] sm:$0x2] %vm1484_vm14, %v1482_v22 }
 0x4f2   :  { %1499 = vst.msk [vmem:[#allocation6 - $0x4] sm:$0x20] %vm1498_vm15, %v1482_v22 }
 0x4f3   :  { %1490 = vst.msk [vmem:[#allocation6 - $0x2] sm:$0x4] %vm1489_vm0, %v1487_v21 }
 0x4f4   :  { %1501 = vst.msk [vmem:[#allocation6 - $0x5] sm:$0x40] %vm1500_vm1, %v1487_v21  ;;  %v1492_v52 = vpop.permute.xlu0 %1491 }
 0x4f5   :  { %1495 = vst.msk [vmem:[#allocation6 - $0x3] sm:$0x8] %vm1494_vm2, %v1492_v52 }
 0x4f6   :  { %1503 = vst.msk [vmem:[#allocation6 - $0x6] sm:$0x80] %vm1502_vm3, %v1492_v52 }
 0x4fd   :  { %v1504_v56 = vld [vmem:[#allocation6] sm:$0x3] }
 0x4fe   :  { %v5452_v57 = vand.u32 4294901760, %v1504_v56 }
 0x500   :  { %v5455_v4 = vsub.f32 %v1504_v56, %v5452_v57 }
 0x502   :  { %v1609_v33 = vand.u32 4294901760, %v5455_v4 }
 0x504   :  { %v1610_v18 = vsub.f32 %v5455_v4, %v1609_v33 }
 0x506   :  { %v1611_v22 = vand.u32 4294901760, %v1610_v18 }
 0x508   :  { %3873 = vmatmul.mubr.f32.vlgmr.msra.gmra.mrb[4].mxu0 %v1611_v22 }
 0x509   :  { %4472 = vmatpush3.bf16.msra.mxu0 %v5374_v6  ;;  %3907 = vmatprep.mubr.msk.f32.mxu0 %vm4798_vm11, %v4792_v1  ;;  %v5479_v6 = vld [vmem:[%s5785_s1 + $0x128] sm:$0xff] }
 0x50a   :  { %4473 = vmatprep.subr.bf16.mxu0 %v4797_v23 }
 0x50d   :  { %4475 = vmatpush3.bf16.msra.mxu0 %v5384_v16  ;;  %v5484_v16 = vld [vmem:[%s5785_s1 + $0x130] sm:$0xff] }
 0x50e   :  { %4476 = vmatprep.subr.bf16.mxu0 %v4797_v23 }
 0x511   :  { %4478 = vmatpush3.bf16.msra.mxu0 %v5394_v39  ;;  %v5489_v39 = vld [vmem:[%s5785_s1 + $0x138] sm:$0xff] }
 0x512   :  { %4479 = vmatprep.subr.bf16.mxu0 %v4797_v23  ;;  %v5791_v18 = vand.u32 4294901760, %v5489_v39 }
 0x514   :  { %v5516_v21 = vsub.f32 %v5489_v39, %v5791_v18 }
 0x515   :  { %4481 = vmatpush3.bf16.msra.mxu0 %v5404_v63  ;;  %v5789_v63 = vand.u32 4294901760, %v5479_v6 }
 0x516   :  { %4482 = vmatprep.subr.bf16.mxu0 %v4797_v23 }
 0x519   :  { %4484 = vmatpush3.bf16.msra.mxu0 %v4483_v13  ;;  %v5790_v13 = vand.u32 4294901760, %v5484_v16 }
 0x51a   :  { %4485 = vmatprep.subr.bf16.mxu0 %v4797_v23 }
 0x51d   :  { %4487 = vmatpush3.bf16.msra.mxu0 %v4486_v11  ;;  %v5498_v11 = vld [vmem:[%s5785_s1 + $0x140] sm:$0xff] }
 0x51e   :  { %4488 = vmatprep.subr.bf16.mxu0 %v4797_v23 }
 0x521   :  { %4490 = vmatpush3.bf16.msra.mxu0 %v4489_v48  ;;  %v5792_v48 = vand.u32 4294901760, %v5498_v11 }
 0x522   :  { %4491 = vmatprep.subr.bf16.mxu0 %v4797_v23 }
 0x523   :  { %v5521_v52 = vsub.f32 %v5498_v11, %v5792_v48 }
 0x525   :  { %4493 = vmatpush3.bf16.msra.mxu0 %v4492_v5  ;;  %v5506_v5 = vsub.f32 %v5479_v6, %v5789_v63  ;;  %v5799_v63 = vand.u32 4294901760, %v5516_v21 }
 0x526   :  { %4494 = vmatprep.subr.bf16.mxu0 %v4797_v23 }
 0x527   :  { %v5797_v56 = vand.u32 4294901760, %v5506_v5 }
 0x528   :  { %3908 = vmatmul.mubr.f32.vlgmr.msra.gmra.mrb[4].mxu0 %v5452_v57 }
 0x529   :  { %4496 = vmatpush3.bf16.msra.mxu0 %v4495_v12  ;;  %3942 = vmatprep.mubr.msk.f32.mxu0 %vm4798_vm11, %v4792_v1  ;;  %v5511_v12 = vsub.f32 %v5484_v16, %v5790_v13  ;;  %v2292_v13 = vand.u32 4294901760, %v5521_v52  ;;  %v2272_v18 = vsub.f32 %v5506_v5, %v5797_v56 }
 0x52a   :  { %4497 = vmatprep.subr.bf16.mxu0 %v4797_v23 }
 0x52b   :  { %v2278_v22 = vand.u32 4294901760, %v5511_v12  ;;  %v2293_v10 = vsub.f32 %v5521_v52, %v2292_v13  ;;  %v2273_v45 = vand.u32 4294901760, %v2272_v18 }
 0x52d   :  { %4499 = vmatpush3.bf16.msra.mxu0 %v4498_v32  ;;  %v2279_v48 = vsub.f32 %v5511_v12, %v2278_v22  ;;  %v2286_v32 = vsub.f32 %v5516_v21, %v5799_v63  ;;  %v2294_v56 = vand.u32 4294901760, %v2293_v10  ;;  %v2321_v10 = vsub.f32 %v2319_v20, %v2320_v60 }
 0x52e   :  { %4500 = vmatprep.subr.bf16.mxu0 %v4797_v23 }
 0x52f   :  { %v2280_v7 = vand.u32 4294901760, %v2279_v48  ;;  %v2287_v42 = vand.u32 4294901760, %v2286_v32 }
 0x531   :  { %4502 = vmatpush3.bf16.msra.mxu0 %v4501_v15  ;;  %v4603_v62 = vpack.c.bf16 %v2280_v7, %v2273_v45  ;;  %v4606_v63 = vpack.c.bf16 %v2294_v56, %v2287_v42  ;;  %v4546_v42 = vpack.c.bf16 %v1641_v3, %v1634_v2  ;;  %v4564_v2 = vpack.c.bf16 %v5806_v47, %v5805_v44 }
 0x532   :  { %4503 = vmatprep.subr.bf16.mxu0 %v4797_v23  ;;  %v2312_v3 = vsub.f32 %v2174_v19, %v2204_v53  ;;  %v5808_v15 = vand.u32 4294901760, %v5484_v16  ;;  %v4600_v16 = vpack.c.bf16 %v2207_v61, %v2204_v53  ;;  %v5812_v44 = vand.u32 4294901760, %v5516_v21 }
 0x533   :  { %4604 = vmatpush3.bf16.msra.mxu1 %v4603_v62  ;;  %v4543_v62 = vpack.c.bf16 %v1627_v36, %v1620_v31  ;;  %v4558_v31 = vpack.c.bf16 %v5802_v59, %v5801_v55  ;;  %v4561_v36 = vpack.c.bf16 %v5804_v30, %v5803_v27  ;;  %v4618_v55 = vpack.c.bf16 %v5521_v52, %v5516_v21 }
 0x534   :  { %4605 = vmatprep.subr.bf16.mxu1 %v4797_v23  ;;  %v2313_v38 = vand.u32 4294901760, %v2312_v3  ;;  %v4624_v18 = vpack.c.bf16 %v2319_v20, %v2312_v3  ;;  %v5811_v30 = vand.u32 4294901760, %v5506_v5  ;;  %v4642_v47 = vpack.c.bf16 %v2292_v13, %v5812_v44  ;;  %v2723_v13 = vld [vmem:[%s5785_s1 + $0x170] sm:$0xff] }
 0x535   :  { %4505 = vmatpush3.bf16.msra.mxu0 %v4504_v37 }
 0x536   :  { %4506 = vmatprep.subr.bf16.mxu0 %v4797_v23  ;;  %v2314_v45 = vsub.f32 %v2312_v3, %v2313_v38  ;;  %v4648_v48 = vpack.c.bf16 %v2320_v60, %v2313_v38 }
 0x537   :  { %4607 = vmatpush3.bf16.msra.mxu1 %v4606_v63 }
 0x538   :  { %4608 = vmatprep.subr.bf16.mxu1 %v4797_v23 }
 0x539   :  { %4508 = vmatpush3.bf16.msra.mxu0 %v4507_v40  ;;  %v2315_v40 = vand.u32 4294901760, %v2314_v45 }
 0x53a   :  { %4509 = vmatprep.subr.bf16.mxu0 %v4797_v23 }
 0x53d   :  { %4511 = vmatpush3.bf16.msra.mxu0 %v4510_v41  ;;  %v2322_v41 = vand.u32 4294901760, %v2321_v10 }
 0x53e   :  { %4512 = vmatprep.subr.bf16.mxu0 %v4797_v23 }
 0x541   :  { %4514 = vmatpush3.bf16.msra.mxu0 %v4513_v8  ;;  %v4612_v8 = vpack.c.bf16 %v2322_v41, %v2315_v40  ;;  %v3238_v41 = vld [vmem:[%s5785_s1 + $0x168] ss:$0 sm:$0xff] }
 0x542   :  { %4515 = vmatprep.subr.bf16.mxu0 %v4797_v23 }
 0x545   :  { %4517 = vmatpush3.bf16.msra.mxu0 %v4516_v14  ;;  %v5809_v14 = vand.u32 4294901760, %v5489_v39 }
 0x546   :  { %4518 = vmatprep.subr.bf16.mxu0 %v4797_v23 }
 0x548   :  { %3943 = vmatmul.mubr.f32.vlgmr.msra.gmra.mrb[4].mxu0 %v5455_v4 }
 0x549   :  { %4520 = vmatpush3.bf16.msra.mxu0 %v5258_v46  ;;  %3977 = vmatprep.mubr.msk.f32.mxu0 %vm4798_vm11, %v4792_v1 }
 0x54a   :  { %4521 = vmatprep.subr.bf16.mxu0 %v4797_v23 }
 0x54d   :  { %4523 = vmatpush3.bf16.msra.mxu0 %v5271_v58 }
 0x54e   :  { %4524 = vmatprep.subr.bf16.mxu0 %v4797_v23 }
 0x551   :  { %4526 = vmatpush3.bf16.msra.mxu0 %v5277_v0 }
 0x552   :  { %4527 = vmatprep.subr.bf16.mxu0 %v4797_v23 }
 0x555   :  { %4529 = vmatpush3.bf16.msra.mxu0 %v5291_v26 }
 0x556   :  { %4530 = vmatprep.subr.bf16.mxu0 %v4797_v23 }
 0x559   :  { %4532 = vmatpush3.bf16.msra.mxu0 %v5307_v43 }
 0x55a   :  { %4533 = vmatprep.subr.bf16.mxu0 %v4797_v23 }
 0x55d   :  { %4535 = vmatpush3.bf16.msra.mxu0 %v5337_v17 }
 0x55e   :  { %4536 = vmatprep.subr.bf16.mxu0 %v4797_v23 }
 0x561   :  { %4538 = vmatpush3.bf16.msra.mxu0 %v5352_v29 }
 0x562   :  { %4539 = vmatprep.subr.bf16.mxu0 %v4797_v23 }
 0x565   :  { %4541 = vmatpush3.bf16.msra.mxu0 %v5358_v28 }
 0x566   :  { %4542 = vmatprep.subr.bf16.mxu0 %v4797_v23 }
 0x568   :  { %3978 = vmatmul.mubr.f32.vlgmr.msra.gmra.mrb[4].mxu0 %v1609_v33  ;;  %v5807_v33 = vand.u32 4294901760, %v5479_v6 }
 0x569   :  { %4544 = vmatpush3.bf16.msra.mxu0 %v4543_v62  ;;  %4012 = vmatprep.mubr.msk.f32.mxu0 %vm4798_vm11, %v4792_v1 }
 0x56a   :  { %4545 = vmatprep.subr.bf16.mxu0 %v4797_v23  ;;  %v5667_v37 = vpack.c.bf16 %v5808_v15, %v5807_v33 }
 0x56d   :  { %4547 = vmatpush3.bf16.msra.mxu0 %v4546_v42 }
 0x56e   :  { %4548 = vmatprep.subr.bf16.mxu0 %v4797_v23 }
 0x571   :  { %4550 = vmatpush3.bf16.msra.mxu0 %v4549_v49 }
 0x572   :  { %4551 = vmatprep.subr.bf16.mxu0 %v4797_v23 }
 0x575   :  { %4553 = vmatpush3.bf16.msra.mxu0 %v4552_v50  ;;  %v4615_v50 = vpack.c.bf16 %v5511_v12, %v5506_v5  ;;  %v2724_v5 = vld [vmem:[%s5785_s1 + $0x178] sm:$0xff]  ;;  %v2736_v12 = vand.u32 4294901760, %v2723_v13 }
 0x576   :  { %4554 = vmatprep.subr.bf16.mxu0 %v4797_v23  ;;  %v2739_v21 = vand.u32 4294901760, %v2724_v5 }
 0x578   :  { %v5733_v52 = vpack.c.bf16 %v2739_v21, %v2736_v12 }
 0x579   :  { %4556 = vmatpush3.bf16.msra.mxu0 %v4555_v54 }
 0x57a   :  { %4557 = vmatprep.subr.bf16.mxu0 %v4797_v23 }
 0x57d   :  { %4559 = vmatpush3.bf16.msra.mxu0 %v4558_v31 }
 0x57e   :  { %4560 = vmatprep.subr.bf16.mxu0 %v4797_v23 }
 0x581   :  { %4562 = vmatpush3.bf16.msra.mxu0 %v4561_v36  ;;  %v4639_v36 = vpack.c.bf16 %v2278_v22, %v5811_v30  ;;  %v2816_v22 = vsub.f32 %v2723_v13, %v2736_v12 }
 0x582   :  { %4563 = vmatprep.subr.bf16.mxu0 %v4797_v23 }
 0x585   :  { %4565 = vmatpush3.bf16.msra.mxu0 %v4564_v2  ;;  %v2823_v2 = vsub.f32 %v2724_v5, %v2739_v21 }
 0x586   :  { %4566 = vmatprep.subr.bf16.mxu0 %v4797_v23 }
 0x587   :  { %v4675_v45 = vpack.c.bf16 %v2823_v2, %v2816_v22 }
 0x588   :  { %4013 = vmatmul.mubr.f32.vlgmr.msra.gmra.mrb[4].mxu0 %v5452_v57 }
 0x589   :  { %4568 = vmatpush3.bf16.msra.mxu0 %v5258_v46  ;;  %4047 = vmatprep.mubr.msk.f32.mxu0 %vm4798_vm11, %v4792_v1  ;;  %v2172_v46 = vld [vmem:[%s5785_s1 + $0x148] sm:$0xff] }
 0x58a   :  { %4569 = vmatprep.subr.bf16.mxu0 %v4797_v23 }
 0x58d   :  { %4571 = vmatpush3.bf16.msra.mxu0 %v5271_v58  ;;  %v2173_v58 = vld [vmem:[%s5785_s1 + $0x150] sm:$0xff] }
 0x58e   :  { %4572 = vmatprep.subr.bf16.mxu0 %v4797_v23 }
 0x591   :  { %4574 = vmatpush3.bf16.msra.mxu0 %v5277_v0  ;;  %v2198_v0 = vand.u32 4294901760, %v2172_v46 }
 0x592   :  { %4575 = vmatprep.subr.bf16.mxu0 %v4797_v23 }
 0x595   :  { %4577 = vmatpush3.bf16.msra.mxu0 %v5291_v26  ;;  %v2201_v26 = vand.u32 4294901760, %v2173_v58 }
 0x596   :  { %4578 = vmatprep.subr.bf16.mxu0 %v4797_v23 }
 0x597   :  { %v4597_v6 = vpack.c.bf16 %v2201_v26, %v2198_v0 }
 0x599   :  { %4580 = vmatpush3.bf16.msra.mxu0 %v5307_v43  ;;  %v2298_v43 = vsub.f32 %v2172_v46, %v2198_v0  ;;  %v2725_v46 = vld [vmem:[%s5785_s1 + $0x180] sm:$0xff] }
 0x59a   :  { %4581 = vmatprep.subr.bf16.mxu0 %v4797_v23  ;;  %v2742_v0 = vand.u32 4294901760, %v2725_v46 }
 0x59b   :  { %v2299_v25 = vand.u32 4294901760, %v2298_v43 }
 0x59c   :  { %v2830_v24 = vsub.f32 %v2725_v46, %v2742_v0 }
 0x59d   :  { %4583 = vmatpush3.bf16.msra.mxu0 %v5337_v17  ;;  %v2305_v17 = vsub.f32 %v2173_v58, %v2201_v26  ;;  %v2726_v58 = vld [vmem:[%s5785_s1 + $0x188] sm:$0xff] }
 0x59e   :  { %4584 = vmatprep.subr.bf16.mxu0 %v4797_v23  ;;  %v2745_v26 = vand.u32 4294901760, %v2726_v58 }
 0x59f   :  { %v2306_v34 = vand.u32 4294901760, %v2305_v17  ;;  %v4621_v63 = vpack.c.bf16 %v2305_v17, %v2298_v43 }
 0x5a0   :  { %v4666_v19 = vpack.c.bf16 %v2745_v26, %v2742_v0 }
 0x5a1   :  { %4586 = vmatpush3.bf16.msra.mxu0 %v5352_v29  ;;  %v2300_v29 = vsub.f32 %v2298_v43, %v2299_v25  ;;  %v4645_v39 = vpack.c.bf16 %v2306_v34, %v2299_v25  ;;  %v2817_v43 = vand.u32 4294901760, %v2816_v22  ;;  %v2837_v25 = vsub.f32 %v2726_v58, %v2745_v26 }
 0x5a2   :  { %4587 = vmatprep.subr.bf16.mxu0 %v4797_v23 }
 0x5a3   :  { %v2301_v9 = vand.u32 4294901760, %v2300_v29  ;;  %v2831_v29 = vand.u32 4294901760, %v2830_v24  ;;  %v4678_v10 = vpack.c.bf16 %v2837_v25, %v2830_v24 }
 0x5a5   :  { %4589 = vmatpush3.bf16.msra.mxu0 %v5358_v28  ;;  %v2307_v28 = vsub.f32 %v2305_v17, %v2306_v34  ;;  %v2824_v17 = vand.u32 4294901760, %v2823_v2  ;;  %v2818_v34 = vsub.f32 %v2816_v22, %v2817_v43  ;;  %v2832_v20 = vsub.f32 %v2830_v24, %v2831_v29 }
 0x5a6   :  { %4590 = vmatprep.subr.bf16.mxu0 %v4797_v23 }
 0x5a7   :  { %v2308_v35 = vand.u32 4294901760, %v2307_v28  ;;  %v2825_v53 = vsub.f32 %v2823_v2, %v2824_v17  ;;  %v2819_v61 = vand.u32 4294901760, %v2818_v34  ;;  %v2838_v28 = vand.u32 4294901760, %v2837_v25 }
 0x5a8   :  { %4048 = vmatmul.mubr.f32.vlgmr.msra.gmra.mrb[4].mxu0 %v5452_v57  ;;  %v5810_v57 = vand.u32 4294901760, %v5498_v11  ;;  %v3237_v11 = vld [vmem:[%s5785_s1 + $0x120] ss:$0 sm:$0xff]  ;;  %v2833_v38 = vand.u32 4294901760, %v2832_v20  ;;  %v4687_v33 = vpack.c.bf16 %v2824_v17, %v2817_v43 }
 0x5a9   :  { %4066 = vmatprep.mubr.msk.f32.mxu0 %vm4798_vm11, %v4792_v1  ;;  %v4609_v7 = vpack.c.bf16 %v2308_v35, %v2301_v9  ;;  %4592 = vmatpush3.bf16.msra.mxu0 %v5667_v37  ;;  %v2826_v3 = vand.u32 4294901760, %v2825_v53  ;;  %v2839_v9 = vsub.f32 %v2837_v25, %v2838_v28  ;;  %v4690_v15 = vpack.c.bf16 %v2838_v28, %v2831_v29 }
 0x5aa   :  { %4593 = vmatprep.subr.bf16.mxu0 %v4797_v23  ;;  %v5676_v4 = vpack.c.bf16 %v5810_v57, %v5809_v14 }
 0x5ab   :  { %4610 = vmatpush3.bf16.msra.mxu1 %v4609_v7  ;;  %v4669_v35 = vpack.c.bf16 %v2826_v3, %v2819_v61  ;;  %v2840_v60 = vand.u32 4294901760, %v2839_v9 }
 0x5ac   :  { %4611 = vmatprep.subr.bf16.mxu1 %v4797_v23 }
 0x5ad   :  { %4595 = vmatpush3.bf16.msra.mxu0 %v5676_v4  ;;  %v4672_v7 = vpack.c.bf16 %v2840_v60, %v2833_v38 }
 0x5ae   :  { %4596 = vmatprep.subr.bf16.mxu0 %v4797_v23 }
 0x5af   :  { %4613 = vmatpush3.bf16.msra.mxu1 %v4612_v8 }
 0x5b0   :  { %4614 = vmatprep.subr.bf16.mxu1 %v4797_v23 }
 0x5b1   :  { %4598 = vmatpush3.bf16.msra.mxu0 %v4597_v6 }
 0x5b2   :  { %4599 = vmatprep.subr.bf16.mxu0 %v4797_v23 }
 0x5b5   :  { %4601 = vmatpush3.bf16.msra.mxu0 %v4600_v16 }
 0x67b   :  { %v2163_v56 = vpop.f32.mrb[4].mxu0 }
 0x67c   :  { %v4698_v32 = vadd.f32 %v3237_v11, %v2163_v56  ;;  %v4049_v62 = vpop.f32.mrb[5].mxu0  ;;  %v3239_v56 = vld [vmem:[%s5785_s1 + $0x190] ss:$0 sm:$0xff] }
 0x67e   :  { %v2167_v42 = vmax.f32 %v4698_v32, 0.0 }
 0x680   :  { %v2183_v49 = vsel %vm2181_vm4, %v2167_v42, 0 }
 0x681   :  { %v2258_v51 = vand.u32 4294901760, %v2183_v49 }
 0x683   :  { %v2259_v54 = vsub.f32 %v2183_v49, %v2258_v51  ;;  %4086 = vmatmul.mubr.f32.vlgmr.msra.gmra.mrb[2].mxu1 %v2258_v51 }
 0x684   :  { %4616 = vmatpush3.bf16.msra.mxu1 %v4615_v50  ;;  %4104 = vmatprep.mubr.msk.f32.mxu1 %vm4798_vm11, %v4792_v1 }
 0x685   :  { %v2260_v59 = vand.u32 4294901760, %v2259_v54  ;;  %4617 = vmatprep.subr.bf16.mxu1 %v4797_v23 }
 0x687   :  { %v2261_v31 = vsub.f32 %v2259_v54, %v2260_v59 }
 0x688   :  { %4619 = vmatpush3.bf16.msra.mxu1 %v4618_v55 }
 0x689   :  { %4620 = vmatprep.subr.bf16.mxu1 %v4797_v23  ;;  %v2262_v27 = vand.u32 4294901760, %v2261_v31 }
 0x68b   :  { %4067 = vmatmul.mubr.f32.vlgmr.msra.gmra.mrb[6].mxu0 %v2262_v27 }
 0x68c   :  { %4622 = vmatpush3.bf16.msra.mxu1 %v4621_v63 }
 0x68d   :  { %4623 = vmatprep.subr.bf16.mxu1 %v4797_v23 }
 0x690   :  { %4625 = vmatpush3.bf16.msra.mxu1 %v4624_v18 }
 0x691   :  { %4626 = vmatprep.subr.bf16.mxu1 %v4797_v23 }
 0x693   :  { %4105 = vmatmul.mubr.f32.vlgmr.msra.gmra.mrb[2].mxu1 %v2259_v54 }
 0x694   :  { %4628 = vmatpush3.bf16.msra.mxu1 %v5667_v37  ;;  %4123 = vmatprep.mubr.msk.f32.mxu1 %vm4798_vm11, %v4792_v1 }
 0x695   :  { %4629 = vmatprep.subr.bf16.mxu1 %v4797_v23 }
 0x698   :  { %4631 = vmatpush3.bf16.msra.mxu1 %v5676_v4 }
 0x699   :  { %4632 = vmatprep.subr.bf16.mxu1 %v4797_v23 }
 0x69c   :  { %4634 = vmatpush3.bf16.msra.mxu1 %v4597_v6 }
 0x69d   :  { %4635 = vmatprep.subr.bf16.mxu1 %v4797_v23 }
 0x6a0   :  { %4637 = vmatpush3.bf16.msra.mxu1 %v4600_v16 }
 0x6a1   :  { %4638 = vmatprep.subr.bf16.mxu1 %v4797_v23 }
 0x6a3   :  { %4124 = vmatmul.mubr.f32.vlgmr.msra.gmra.mrb[2].mxu1 %v2260_v59 }
 0x6a4   :  { %4640 = vmatpush3.bf16.msra.mxu1 %v4639_v36  ;;  %4142 = vmatprep.mubr.msk.f32.mxu1 %vm4798_vm11, %v4792_v1 }
 0x6a5   :  { %4641 = vmatprep.subr.bf16.mxu1 %v4797_v23 }
 0x6a8   :  { %4643 = vmatpush3.bf16.msra.mxu1 %v4642_v47 }
 0x6a9   :  { %4644 = vmatprep.subr.bf16.mxu1 %v4797_v23 }
 0x6ac   :  { %4646 = vmatpush3.bf16.msra.mxu1 %v4645_v39 }
 0x6ad   :  { %4647 = vmatprep.subr.bf16.mxu1 %v4797_v23 }
 0x6b0   :  { %4649 = vmatpush3.bf16.msra.mxu1 %v4648_v48 }
 0x6b1   :  { %4650 = vmatprep.subr.bf16.mxu1 %v4797_v23 }
 0x6b3   :  { %4143 = vmatmul.mubr.f32.vlgmr.msra.gmra.mrb[2].mxu1 %v2258_v51 }
 0x6b4   :  { %4652 = vmatpush3.bf16.msra.mxu1 %v5667_v37  ;;  %4161 = vmatprep.mubr.msk.f32.mxu1 %vm4798_vm11, %v4792_v1 }
 0x6b5   :  { %4653 = vmatprep.subr.bf16.mxu1 %v4797_v23 }
 0x6b8   :  { %4655 = vmatpush3.bf16.msra.mxu1 %v5676_v4 }
 0x6b9   :  { %4656 = vmatprep.subr.bf16.mxu1 %v4797_v23 }
 0x6bc   :  { %4658 = vmatpush3.bf16.msra.mxu1 %v4597_v6 }
 0x6bd   :  { %4659 = vmatprep.subr.bf16.mxu1 %v4797_v23 }
 0x6c0   :  { %4661 = vmatpush3.bf16.msra.mxu1 %v4600_v16 }
 0x6c1   :  { %4662 = vmatprep.subr.bf16.mxu1 %v4797_v23 }
 0x6c3   :  { %4162 = vmatmul.mubr.f32.vlgmr.msra.gmra.mrb[2].mxu1 %v2258_v51 }
 0x6c4   :  { %4172 = vmatprep.mubr.msk.f32.mxu1 %vm4798_vm11, %v4792_v1  ;;  %4664 = vmatpush3.bf16.msra.mxu1 %v5733_v52 }
 0x6c5   :  { %4665 = vmatprep.subr.bf16.mxu1 %v4797_v23 }
 0x6c8   :  { %4667 = vmatpush3.bf16.msra.mxu1 %v4666_v19 }
 0x6c9   :  { %4668 = vmatprep.subr.bf16.mxu1 %v4797_v23 }
 0x75e   :  { %v2264_v37 = vpop.f32.mrb[6].mxu0 }
 0x75f   :  { %v4068_v40 = vpop.f32.mrb[7].mxu0  ;;  %v2265_v8 = vadd.f32 %v3238_v41, %v2264_v37 }
 0x796   :  { %v2718_v14 = vpop.f32.mrb[2].mxu1 }
 0x797   :  { %v4700_v57 = vadd.f32 %v2718_v14, %v2265_v8  ;;  %v4163_v4 = vpop.f32.mrb[3].mxu1 }
 0x799   :  { %v2722_v6 = vmax.f32 %v4700_v57, 0.0 }
 0x79b   :  { %v2733_v16 = vsel %vm761_vm7, %v2722_v6, 0 }
 0x79c   :  { %v2804_v63 = vand.u32 4294901760, %v2733_v16 }
 0x79e   :  { %v2805_v18 = vsub.f32 %v2733_v16, %v2804_v63 }
 0x7a0   :  { %v2806_v39 = vand.u32 4294901760, %v2805_v18 }
 0x7a2   :  { %v2807_v48 = vsub.f32 %v2805_v18, %v2806_v39 }
 0x7a4   :  { %v2808_v11 = vand.u32 4294901760, %v2807_v48 }
 0x7a6   :  { %4173 = vmatmul.mubr.f32.vlgmr.msra.gmra.mrb[4].mxu1 %v2808_v11 }
 0x7a7   :  { %4670 = vmatpush3.bf16.msra.mxu1 %v4669_v35  ;;  %4183 = vmatprep.mubr.msk.f32.mxu1 %vm4798_vm11, %v4792_v1 }
 0x7a8   :  { %4671 = vmatprep.subr.bf16.mxu1 %v4797_v23 }
 0x7ab   :  { %4673 = vmatpush3.bf16.msra.mxu1 %v4672_v7 }
 0x7ac   :  { %4674 = vmatprep.subr.bf16.mxu1 %v4797_v23 }
 0x7ae   :  { %4184 = vmatmul.mubr.f32.vlgmr.msra.gmra.mrb[4].mxu1 %v2804_v63 }
 0x7af   :  { %4676 = vmatpush3.bf16.msra.mxu1 %v4675_v45  ;;  %4194 = vmatprep.mubr.msk.f32.mxu1 %vm4798_vm11, %v4792_v1 }
 0x7b0   :  { %4677 = vmatprep.subr.bf16.mxu1 %v4797_v23 }
 0x7b3   :  { %4679 = vmatpush3.bf16.msra.mxu1 %v4678_v10 }
 0x7b4   :  { %4680 = vmatprep.subr.bf16.mxu1 %v4797_v23 }
 0x7b6   :  { %4195 = vmatmul.mubr.f32.vlgmr.msra.gmra.mrb[4].mxu1 %v2805_v18 }
 0x7b7   :  { %4682 = vmatpush3.bf16.msra.mxu1 %v5733_v52  ;;  %4205 = vmatprep.mubr.msk.f32.mxu1 %vm4798_vm11, %v4792_v1 }
 0x7b8   :  { %4683 = vmatprep.subr.bf16.mxu1 %v4797_v23 }
 0x7bb   :  { %4685 = vmatpush3.bf16.msra.mxu1 %v4666_v19 }
 0x7bc   :  { %4686 = vmatprep.subr.bf16.mxu1 %v4797_v23 }
 0x7be   :  { %4206 = vmatmul.mubr.f32.vlgmr.msra.gmra.mrb[4].mxu1 %v2806_v39 }
 0x7bf   :  { %4688 = vmatpush3.bf16.msra.mxu1 %v4687_v33  ;;  %4216 = vmatprep.mubr.msk.f32.mxu1 %vm4798_vm11, %v4792_v1 }
 0x7c0   :  { %4689 = vmatprep.subr.bf16.mxu1 %v4797_v23 }
 0x7c3   :  { %4691 = vmatpush3.bf16.msra.mxu1 %v4690_v15 }
 0x7c4   :  { %4692 = vmatprep.subr.bf16.mxu1 %v4797_v23 }
 0x7c6   :  { %4217 = vmatmul.mubr.f32.vlgmr.msra.gmra.mrb[4].mxu1 %v2804_v63 }
 0x7c7   :  { %4694 = vmatpush3.bf16.msra.mxu1 %v5733_v52  ;;  %4227 = vmatprep.mubr.msk.f32.mxu1 %vm4798_vm11, %v4792_v1 }
 0x7c8   :  { %4695 = vmatprep.subr.bf16.mxu1 %v4797_v23 }
 0x7cb   :  { %4697 = vmatpush3.bf16.msra.mxu1 %v4666_v19 }
 0x7ce   :  { %4228 = vmatmul.mubr.f32.vlgmr.msra.gmra.mrb[4].mxu1 %v2804_v63 }
 0x8a1   :  { %v3216_v32 = vpop.f32.mrb[4].mxu1 }
 0x8a2   :  { %v4701_v62 = vadd.f32 %v3239_v56, %v3216_v32  ;;  %v4229_v42 = vpop.f32.mrb[5].mxu1 }
 0x8a4   :  { %3220 = vst [vmem:[#allocation7] sm:$0x3] %v4701_v62 }
 0x8a5   :  { %4779 = shalt.err (!%p4776_p4)
}
 0x8a6   :  { %s4780_s15 = scalar_lea.hbm %s5786_s2, 32 }
 0x8a7   :  { %p4781_p5 = scmp.ne.s32.totalorder %s5786_s2, %s4780_s15  ;;  %p4784_p6 = scmp.lt.u32.totalorder %s4780_s15, %s5786_s2 }
 0x8a9   :  { %p4786_p7 = pnand %p4784_p6, %p4781_p5 }
 0x8ab   :  { %4789 = shalt.err (!%p4786_p7)
}
 0x8ac   :  { %3230 = dma.vmem_to_hbm [thread:$0]  %s3228_s29, 32, %s5786_s2, [#allocation8]  }
 0x8ad   :  { %4790 = dma.done.wait [#allocation8], 32  }
 0x8ae   :  { %4791 = vsyncadd [#allocation8], 4294967264 }
 0x8af   :  { %3234 = vsyncpa [#allocation8], 1 }

</bundles_post_ra>
